<compile_context>
chip_gen: v6e
topology: v6e:2x2x1
jax: 0.10.0
libtpu: 0.0.40
codegen_flags: <defaults>
</compile_context>

<pallas_src>
import functools

import jax
import jax.numpy as jnp
import numpy as np
from jax.experimental import pallas as pl
from jax.experimental.pallas import tpu as pltpu


def _round_up(x, m):
    return ((x + m - 1) // m) * m


def _pick_vmem_limit(est_bytes):
    """VMEM limit with headroom; never asks for the full capacity (v7x=64MiB)."""
    try:
        cap = pltpu.get_tpu_info().vmem_capacity_bytes
    except Exception:
        cap = 64 * 1024 * 1024
    headroom_cap = int(cap * 3 // 4)
    want = max(32 * 1024 * 1024, int(est_bytes * 5 // 4))
    return max(min(want, headroom_cap), 16 * 1024 * 1024)


def _cross_attn_fused_kernel(x_ref, kin_ref, vin_ref,
                             wq_ref, wk_ref, wv_ref, wp_ref, bp_ref,
                             o_ref, kproj_ref, vproj_ref,
                             *, num_heads, head_dim, approx_recip):
    """One (batch, query-tile) grid step; all heads handled in-step.

    x_ref: (TN, C)      kin_ref/vin_ref: (Nk/Nv, C)
    wq/wk/wv_ref: (C, C) resident (scale folded into wq)
    wp_ref: (C, out)    bp_ref: (1, out)
    o_ref: (TN, out)    kproj_ref/vproj_ref: (Nk/Nv, C) persistent VMEM scratch
    """
    i = pl.program_id(1)
    dt = x_ref.dtype
    D = head_dim

    # K/V projections depend only on the batch element (outer grid axis):
    # compute them once on the first query tile and cache in VMEM scratch.
    @pl.when(i == 0)
    def _project_kv():
        kproj_ref[...] = jnp.dot(kin_ref[...], wk_ref[...],
                                 preferred_element_type=jnp.float32).astype(dt)
        vproj_ref[...] = jnp.dot(vin_ref[...], wv_ref[...],
                                 preferred_element_type=jnp.float32).astype(dt)

    x = x_ref[...]
    # Fused lane-dense Q projection (K = C contraction); scale already in Wq.
    q = jnp.dot(x, wq_ref[...], preferred_element_type=jnp.float32).astype(dt)
    k = kproj_ref[...]
    v = vproj_ref[...]

    # Per-head attention (static unroll over heads; head slices are static
    # lane slices). Softmax in f32; denominator reciprocal on the EUP.
    head_outs = []
    for h in range(num_heads):
        sl = slice(h * D, (h + 1) * D)
        qh = q[:, sl]
        kh = k[:, sl]
        vh = v[:, sl]
        s = jax.lax.dot_general(qh, kh, (((1,), (1,)), ((), ())),
                                preferred_element_type=jnp.float32)   # (TN, Nk)
        s = s - jnp.max(s, axis=-1, keepdims=True)
        p = jnp.exp(s)
        l = jnp.sum(p, axis=-1, keepdims=True)
        if approx_recip:
            p = p * pl.reciprocal(l, approx=True)
        else:
            p = p / l
        p = p.astype(dt)
        head_outs.append(
            jnp.dot(p, vh, preferred_element_type=jnp.float32).astype(dt))

    # Re-assemble (TN, C) and do ONE lane-dense output projection (K = C).
    o = jnp.concatenate(head_outs, axis=-1)
    out = jnp.dot(o, wp_ref[...], preferred_element_type=jnp.float32)
    out = out + bp_ref[...].astype(jnp.float32)
    o_ref[...] = out.astype(o_ref.dtype)


def cross_attention(x, k_in, v_in, wq, wk, wv, wp, bp, *, num_heads,
                    block_n=None, use_bf16_compute=False, approx_recip=True):
    """x: (B, N, C); k_in: (B, Nk, C); v_in: (B, Nv, C).
    wq/wk/wv: (C, C) pre-transposed, wp: (C, out_dim), bp: (out_dim,)."""
    B, N, C = x.shape
    _, Nk, _ = k_in.shape
    _, Nv, _ = v_in.shape
    out_dim = wp.shape[1]
    assert C % num_heads == 0
    D = C // num_heads
    scale = D ** (-0.5)
    out_dtype = x.dtype

    if use_bf16_compute:
        # Opt-in bf16 MXU path (f32 softmax/accumulation kept inside kernel).
        x = x.astype(jnp.bfloat16)
        k_in = k_in.astype(jnp.bfloat16)
        v_in = v_in.astype(jnp.bfloat16)
        wq = wq.astype(jnp.bfloat16)
        wk = wk.astype(jnp.bfloat16)
        wv = wv.astype(jnp.bfloat16)
        wp = wp.astype(jnp.bfloat16)

    # Fold the softmax scale into Wq (one-time weight constant).
    wq = wq * jnp.asarray(scale, wq.dtype)
    bp2 = bp.reshape(1, out_dim)

    # Query-sequence tiling with host-side padding (never a full-N fallback).
    if block_n is None:
        block_n = 256
    block_n = int(min(block_n, _round_up(N, 8)))
    block_n = _round_up(block_n, 8)
    N_pad = _round_up(N, block_n)
    if N_pad != N:
        x = jnp.pad(x, ((0, 0), (0, N_pad - N), (0, 0)))
    n_tiles = N_pad // block_n

    itemsize = jnp.dtype(x.dtype).itemsize
    est_vmem = (2 * block_n * C * itemsize                       # x tile (dbl-buf)
                + 2 * block_n * out_dim * itemsize               # out tile
                + 2 * (Nk + Nv) * C * itemsize                   # k/v inputs
                + 2 * (3 * C * C + C * out_dim + out_dim) * itemsize  # weights
                + (Nk + Nv) * C * itemsize                       # projected K/V
                + 4 * block_n * max(Nk, Nv) * 4)                 # score temps (f32)
    vmem_limit = _pick_vmem_limit(est_vmem)

    kernel = functools.partial(_cross_attn_fused_kernel,
                               num_heads=num_heads, head_dim=D,
                               approx_recip=approx_recip)

    out = pl.pallas_call(
        kernel,
        out_shape=jax.ShapeDtypeStruct((B, N_pad, out_dim), out_dtype),
        grid_spec=pltpu.PrefetchScalarGridSpec(
            num_scalar_prefetch=0,
            grid=(B, n_tiles),
            in_specs=[
                pl.BlockSpec((None, block_n, C), lambda b, i: (b, i, 0)),  # x tile
                pl.BlockSpec((None, Nk, C), lambda b, i: (b, 0, 0)),       # k input
                pl.BlockSpec((None, Nv, C), lambda b, i: (b, 0, 0)),       # v input
                pl.BlockSpec((C, C), lambda b, i: (0, 0)),                 # Wq (resident)
                pl.BlockSpec((C, C), lambda b, i: (0, 0)),                 # Wk (resident)
                pl.BlockSpec((C, C), lambda b, i: (0, 0)),                 # Wv (resident)
                pl.BlockSpec((C, out_dim), lambda b, i: (0, 0)),           # Wp (resident)
                pl.BlockSpec((1, out_dim), lambda b, i: (0, 0)),           # proj bias
            ],
            out_specs=pl.BlockSpec((None, block_n, out_dim),
                                   lambda b, i: (b, i, 0)),
            scratch_shapes=[pltpu.VMEM((Nk, C), x.dtype),   # cached projected K
                            pltpu.VMEM((Nv, C), x.dtype)],  # cached projected V
        ),
        compiler_params=pltpu.CompilerParams(
            # Tile axis is "arbitrary" so the cached-K/V scratch (filled at
            # i == 0) is always valid within a core; batch axis is parallel
            # for megacore / dual-TC sharding.
            dimension_semantics=("parallel", "arbitrary"),
            vmem_limit_bytes=int(vmem_limit),
        ),
    )(x, k_in, v_in, wq, wk, wv, wp, bp2)

    if N_pad != N:
        out = out[:, :N, :]
    return out


def cross_attention_ref(x, k_in, v_in, wq, wk, wv, wp, bp, *, num_heads):
    """Pure-JAX reference mirroring the PyTorch forward."""
    B, N, C = x.shape
    Nk = k_in.shape[1]
    Nv = v_in.shape[1]
    D = C // num_heads
    scale = D ** (-0.5)
    q = (x @ wq).reshape(B, N, num_heads, D).transpose(0, 2, 1, 3) * scale
    k = (k_in @ wk).reshape(B, Nk, num_heads, D).transpose(0, 2, 1, 3)
    v = (v_in @ wv).reshape(B, Nv, num_heads, D).transpose(0, 2, 1, 3)
    attn = jnp.einsum("bhqd,bhkd->bhqk", q, k)
    attn = jax.nn.softmax(attn, axis=-1)
    o = jnp.einsum("bhqk,bhkd->bhqd", attn, v)
    o = o.transpose(0, 2, 1, 3).reshape(B, N, C)
    return o @ wp + bp


def _make_inputs(key, B, N, Nk, Nv, C, out_dim):
    kx, kk, kv, kwq, kwk, kwv, kwp, kbp = jax.random.split(key, 8)
    x = jax.random.normal(kx, (B, N, C), dtype=jnp.float32)
    k_in = jax.random.normal(kk, (B, Nk, C), dtype=jnp.float32)
    v_in = jax.random.normal(kv, (B, Nv, C), dtype=jnp.float32)
    wq = 0.05 * jax.random.normal(kwq, (C, C), dtype=jnp.float32)
    wk = 0.05 * jax.random.normal(kwk, (C, C), dtype=jnp.float32)
    wv = 0.05 * jax.random.normal(kwv, (C, C), dtype=jnp.float32)
    wp = 0.05 * jax.random.normal(kwp, (C, out_dim), dtype=jnp.float32)
    bp = 0.01 * jax.random.normal(kbp, (out_dim,), dtype=jnp.float32)
    return x, k_in, v_in, wq, wk, wv, wp, bp


if __name__ == "__main__":
    # Shapes consistent with the module: dim=128, num_heads=8 (head_dim=16).
    num_heads = 8

    # 1) Single-tile path (B=2, N=16, Nk=Nv=24, C=128).
    B, N, Nk, Nv, C = 2, 16, 24, 24, 128
    out_dim = C
    x, k_in, v_in, wq, wk, wv, wp, bp = _make_inputs(
        jax.random.PRNGKey(0), B, N, Nk, Nv, C, out_dim)

    out = cross_attention(x, k_in, v_in, wq, wk, wv, wp, bp, num_heads=num_heads)
    out = jax.block_until_ready(out)
    ref = cross_attention_ref(x, k_in, v_in, wq, wk, wv, wp, bp, num_heads=num_heads)
    # Tolerance covers the approximate (EUP) reciprocal in the softmax denominator.
    np.testing.assert_allclose(np.asarray(out), np.asarray(ref), rtol=5e-3, atol=5e-3)

    # 2) Multi-tile / ragged-N path: exercises host padding + cached K/V scratch.
    B2, N2, Nk2, Nv2 = 2, 40, 56, 56
    x2, k2, v2, wq2, wk2, wv2, wp2, bp2 = _make_inputs(
        jax.random.PRNGKey(1), B2, N2, Nk2, Nv2, C, out_dim)
    out2 = cross_attention(x2, k2, v2, wq2, wk2, wv2, wp2, bp2,
                           num_heads=num_heads, block_n=16)
    out2 = jax.block_until_ready(out2)
    ref2 = cross_attention_ref(x2, k2, v2, wq2, wk2, wv2, wp2, bp2,
                               num_heads=num_heads)
    np.testing.assert_allclose(np.asarray(out2), np.asarray(ref2),
                               rtol=5e-3, atol=5e-3)

    # 3) Opt-in bf16 MXU compute path (f32 softmax/accum inside the kernel).
    out3 = cross_attention(x, k_in, v_in, wq, wk, wv, wp, bp,
                           num_heads=num_heads, use_bf16_compute=True)
    out3 = jax.block_until_ready(out3)
    np.testing.assert_allclose(np.asarray(out3), np.asarray(ref),
                               rtol=5e-2, atol=5e-2)

    print("KERNEL_OK")
</pallas_src>

<mosaic_0001>
module attributes {stable_mosaic.version = 11 : i64} {
  func.func @_cross_attn_fused_kernel(%arg0: i32, %arg1: i32, %arg2: memref<1x16x128xf32, #tpu.memory_space<vmem>>, %arg3: memref<1x24x128xf32, #tpu.memory_space<vmem>>, %arg4: memref<1x24x128xf32, #tpu.memory_space<vmem>>, %arg5: memref<128x128xf32, #tpu.memory_space<vmem>>, %arg6: memref<128x128xf32, #tpu.memory_space<vmem>>, %arg7: memref<128x128xf32, #tpu.memory_space<vmem>>, %arg8: memref<128x128xf32, #tpu.memory_space<vmem>>, %arg9: memref<1x128xf32, #tpu.memory_space<vmem>>, %arg10: memref<1x16x128xf32, #tpu.memory_space<vmem>>, %arg11: memref<24x128xf32, #tpu.memory_space<vmem>>, %arg12: memref<24x128xf32, #tpu.memory_space<vmem>>) attributes {dimension_semantics = [#tpu.dimension_semantics<parallel>, #tpu.dimension_semantics<arbitrary>], iteration_bounds = array<i64: 2, 1>, scalar_prefetch = 0 : i64, scratch_operands = 2 : i64, tpu.core_type = #tpu.core_type<tc>, window_params = [{transform_indices = @transform_0, window_bounds = array<i64: 1, 16, 128>}, {transform_indices = @transform_1, window_bounds = array<i64: 1, 24, 128>}, {transform_indices = @transform_2, window_bounds = array<i64: 1, 24, 128>}, {pipeline_mode = #tpu.pipeline_mode<synchronous>, transform_indices = @transform_3, window_bounds = array<i64: 128, 128>}, {pipeline_mode = #tpu.pipeline_mode<synchronous>, transform_indices = @transform_4, window_bounds = array<i64: 128, 128>}, {pipeline_mode = #tpu.pipeline_mode<synchronous>, transform_indices = @transform_5, window_bounds = array<i64: 128, 128>}, {pipeline_mode = #tpu.pipeline_mode<synchronous>, transform_indices = @transform_6, window_bounds = array<i64: 128, 128>}, {pipeline_mode = #tpu.pipeline_mode<synchronous>, transform_indices = @transform_7, window_bounds = array<i64: 1, 128>}, {transform_indices = @transform_8, window_bounds = array<i64: 1, 16, 128>}]} {
    %c0_i32 = arith.constant 0 : i32
    %0 = arith.cmpi eq, %arg1, %c0_i32 : i32
    %1 = arith.extui %0 : i1 to i32
    %c0_i32_0 = arith.constant 0 : i32
    %2 = arith.cmpi ne, %1, %c0_i32_0 : i32
    scf.if %2 {
      %c0_49 = arith.constant 0 : index
      %c0_50 = arith.constant 0 : index
      %c0_51 = arith.constant 0 : index
      %138 = vector.load %arg3[%c0_49, %c0_50, %c0_51] : memref<1x24x128xf32, #tpu.memory_space<vmem>>, vector<1x24x128xf32>
      %139 = vector.shape_cast %138 : vector<1x24x128xf32> to vector<24x128xf32>
      %c0_52 = arith.constant 0 : index
      %c0_53 = arith.constant 0 : index
      %140 = vector.load %arg6[%c0_52, %c0_53] : memref<128x128xf32, #tpu.memory_space<vmem>>, vector<128x128xf32>
      %cst_54 = arith.constant dense<0.000000e+00> : vector<24x128xf32>
      %141 = tpu.matmul %139, %140, %cst_54 {dimension_numbers = #tpu.dot_dimension_numbers<[1], [0], [0], [1], [0, 0, 1, 1], [], []>} : vector<24x128xf32>, vector<128x128xf32>, vector<24x128xf32> -> vector<24x128xf32>
      %c0_55 = arith.constant 0 : index
      %c0_56 = arith.constant 0 : index
      %142 = vector.load %arg11[%c0_55, %c0_56] : memref<24x128xf32, #tpu.memory_space<vmem>>, vector<24x128xf32>
      tpu.vector_store %arg11[%c0_55, %c0_56], %141 {strides = array<i32>} : memref<24x128xf32, #tpu.memory_space<vmem>>, vector<24x128xf32>,
      %c0_57 = arith.constant 0 : index
      %c0_58 = arith.constant 0 : index
      %c0_59 = arith.constant 0 : index
      %143 = vector.load %arg4[%c0_57, %c0_58, %c0_59] : memref<1x24x128xf32, #tpu.memory_space<vmem>>, vector<1x24x128xf32>
      %144 = vector.shape_cast %143 : vector<1x24x128xf32> to vector<24x128xf32>
      %c0_60 = arith.constant 0 : index
      %c0_61 = arith.constant 0 : index
      %145 = vector.load %arg7[%c0_60, %c0_61] : memref<128x128xf32, #tpu.memory_space<vmem>>, vector<128x128xf32>
      %cst_62 = arith.constant dense<0.000000e+00> : vector<24x128xf32>
      %146 = tpu.matmul %144, %145, %cst_62 {dimension_numbers = #tpu.dot_dimension_numbers<[1], [0], [0], [1], [0, 0, 1, 1], [], []>} : vector<24x128xf32>, vector<128x128xf32>, vector<24x128xf32> -> vector<24x128xf32>
      %c0_63 = arith.constant 0 : index
      %c0_64 = arith.constant 0 : index
      %147 = vector.load %arg12[%c0_63, %c0_64] : memref<24x128xf32, #tpu.memory_space<vmem>>, vector<24x128xf32>
      tpu.vector_store %arg12[%c0_63, %c0_64], %146 {strides = array<i32>} : memref<24x128xf32, #tpu.memory_space<vmem>>, vector<24x128xf32>,
    } else {
    }
    %c0 = arith.constant 0 : index
    %c0_1 = arith.constant 0 : index
    %c0_2 = arith.constant 0 : index
    %3 = vector.load %arg2[%c0, %c0_1, %c0_2] : memref<1x16x128xf32, #tpu.memory_space<vmem>>, vector<1x16x128xf32>
    %4 = vector.shape_cast %3 : vector<1x16x128xf32> to vector<16x128xf32>
    %c0_3 = arith.constant 0 : index
    %c0_4 = arith.constant 0 : index
    %5 = vector.load %arg5[%c0_3, %c0_4] : memref<128x128xf32, #tpu.memory_space<vmem>>, vector<128x128xf32>
    %cst = arith.constant dense<0.000000e+00> : vector<16x128xf32>
    %6 = tpu.matmul %4, %5, %cst {dimension_numbers = #tpu.dot_dimension_numbers<[1], [0], [0], [1], [0, 0, 1, 1], [], []>} : vector<16x128xf32>, vector<128x128xf32>, vector<16x128xf32> -> vector<16x128xf32>
    %c0_5 = arith.constant 0 : index
    %c0_6 = arith.constant 0 : index
    %7 = vector.load %arg11[%c0_5, %c0_6] : memref<24x128xf32, #tpu.memory_space<vmem>>, vector<24x128xf32>
    %c0_7 = arith.constant 0 : index
    %c0_8 = arith.constant 0 : index
    %8 = vector.load %arg12[%c0_7, %c0_8] : memref<24x128xf32, #tpu.memory_space<vmem>>, vector<24x128xf32>
    %9 = vector.extract_strided_slice %6 {offsets = [0, 0], sizes = [16, 16], strides = [1, 1]} : vector<16x128xf32> to vector<16x16xf32>
    %10 = vector.extract_strided_slice %7 {offsets = [0, 0], sizes = [24, 16], strides = [1, 1]} : vector<24x128xf32> to vector<24x16xf32>
    %11 = vector.extract_strided_slice %8 {offsets = [0, 0], sizes = [24, 16], strides = [1, 1]} : vector<24x128xf32> to vector<24x16xf32>
    %cst_9 = arith.constant dense<0.000000e+00> : vector<16x24xf32>
    %12 = tpu.matmul %9, %10, %cst_9 {dimension_numbers = #tpu.dot_dimension_numbers<[1], [1], [0], [0], [0, 0, 1, 0], [], []>} : vector<16x16xf32>, vector<24x16xf32>, vector<16x24xf32> -> vector<16x24xf32>
    %cst_10 = arith.constant dense<0xFF800000> : vector<16xf32>
    %13 = vector.multi_reduction <maximumf>, %12, %cst_10 [1] : vector<16x24xf32> to vector<16xf32>
    %14 = vector.shape_cast %13 : vector<16xf32> to vector<16x1xf32>
    %15 = vector.broadcast %14 : vector<16x1xf32> to vector<16x24xf32>
    %16 = arith.subf %12, %15 : vector<16x24xf32>
    %17 = math.exp %16 : vector<16x24xf32>
    %cst_11 = arith.constant dense<0.000000e+00> : vector<16xf32>
    %18 = vector.multi_reduction <add>, %17, %cst_11 [1] : vector<16x24xf32> to vector<16xf32>
    %19 = vector.shape_cast %18 : vector<16xf32> to vector<16x1xf32>
    %20 = tpu.reciprocal %19 {approx = true} : vector<16x1xf32> -> vector<16x1xf32>
    %21 = vector.broadcast %20 : vector<16x1xf32> to vector<16x24xf32>
    %22 = arith.mulf %17, %21 : vector<16x24xf32>
    %cst_12 = arith.constant dense<0.000000e+00> : vector<16x16xf32>
    %23 = tpu.matmul %22, %11, %cst_12 {dimension_numbers = #tpu.dot_dimension_numbers<[1], [0], [0], [1], [0, 0, 1, 1], [], []>} : vector<16x24xf32>, vector<24x16xf32>, vector<16x16xf32> -> vector<16x16xf32>
    %24 = vector.extract_strided_slice %6 {offsets = [0, 16], sizes = [16, 16], strides = [1, 1]} : vector<16x128xf32> to vector<16x16xf32>
    %25 = vector.extract_strided_slice %7 {offsets = [0, 16], sizes = [24, 16], strides = [1, 1]} : vector<24x128xf32> to vector<24x16xf32>
    %26 = vector.extract_strided_slice %8 {offsets = [0, 16], sizes = [24, 16], strides = [1, 1]} : vector<24x128xf32> to vector<24x16xf32>
    %cst_13 = arith.constant dense<0.000000e+00> : vector<16x24xf32>
    %27 = tpu.matmul %24, %25, %cst_13 {dimension_numbers = #tpu.dot_dimension_numbers<[1], [1], [0], [0], [0, 0, 1, 0], [], []>} : vector<16x16xf32>, vector<24x16xf32>, vector<16x24xf32> -> vector<16x24xf32>
    %cst_14 = arith.constant dense<0xFF800000> : vector<16xf32>
    %28 = vector.multi_reduction <maximumf>, %27, %cst_14 [1] : vector<16x24xf32> to vector<16xf32>
    %29 = vector.shape_cast %28 : vector<16xf32> to vector<16x1xf32>
    %30 = vector.broadcast %29 : vector<16x1xf32> to vector<16x24xf32>
    %31 = arith.subf %27, %30 : vector<16x24xf32>
    %32 = math.exp %31 : vector<16x24xf32>
    %cst_15 = arith.constant dense<0.000000e+00> : vector<16xf32>
    %33 = vector.multi_reduction <add>, %32, %cst_15 [1] : vector<16x24xf32> to vector<16xf32>
    %34 = vector.shape_cast %33 : vector<16xf32> to vector<16x1xf32>
    %35 = tpu.reciprocal %34 {approx = true} : vector<16x1xf32> -> vector<16x1xf32>
    %36 = vector.broadcast %35 : vector<16x1xf32> to vector<16x24xf32>
    %37 = arith.mulf %32, %36 : vector<16x24xf32>
    %cst_16 = arith.constant dense<0.000000e+00> : vector<16x16xf32>
    %38 = tpu.matmul %37, %26, %cst_16 {dimension_numbers = #tpu.dot_dimension_numbers<[1], [0], [0], [1], [0, 0, 1, 1], [], []>} : vector<16x24xf32>, vector<24x16xf32>, vector<16x16xf32> -> vector<16x16xf32>
    %39 = vector.extract_strided_slice %6 {offsets = [0, 32], sizes = [16, 16], strides = [1, 1]} : vector<16x128xf32> to vector<16x16xf32>
    %40 = vector.extract_strided_slice %7 {offsets = [0, 32], sizes = [24, 16], strides = [1, 1]} : vector<24x128xf32> to vector<24x16xf32>
    %41 = vector.extract_strided_slice %8 {offsets = [0, 32], sizes = [24, 16], strides = [1, 1]} : vector<24x128xf32> to vector<24x16xf32>
    %cst_17 = arith.constant dense<0.000000e+00> : vector<16x24xf32>
    %42 = tpu.matmul %39, %40, %cst_17 {dimension_numbers = #tpu.dot_dimension_numbers<[1], [1], [0], [0], [0, 0, 1, 0], [], []>} : vector<16x16xf32>, vector<24x16xf32>, vector<16x24xf32> -> vector<16x24xf32>
    %cst_18 = arith.constant dense<0xFF800000> : vector<16xf32>
    %43 = vector.multi_reduction <maximumf>, %42, %cst_18 [1] : vector<16x24xf32> to vector<16xf32>
    %44 = vector.shape_cast %43 : vector<16xf32> to vector<16x1xf32>
    %45 = vector.broadcast %44 : vector<16x1xf32> to vector<16x24xf32>
    %46 = arith.subf %42, %45 : vector<16x24xf32>
    %47 = math.exp %46 : vector<16x24xf32>
    %cst_19 = arith.constant dense<0.000000e+00> : vector<16xf32>
    %48 = vector.multi_reduction <add>, %47, %cst_19 [1] : vector<16x24xf32> to vector<16xf32>
    %49 = vector.shape_cast %48 : vector<16xf32> to vector<16x1xf32>
    %50 = tpu.reciprocal %49 {approx = true} : vector<16x1xf32> -> vector<16x1xf32>
    %51 = vector.broadcast %50 : vector<16x1xf32> to vector<16x24xf32>
    %52 = arith.mulf %47, %51 : vector<16x24xf32>
    %cst_20 = arith.constant dense<0.000000e+00> : vector<16x16xf32>
    %53 = tpu.matmul %52, %41, %cst_20 {dimension_numbers = #tpu.dot_dimension_numbers<[1], [0], [0], [1], [0, 0, 1, 1], [], []>} : vector<16x24xf32>, vector<24x16xf32>, vector<16x16xf32> -> vector<16x16xf32>
    %54 = vector.extract_strided_slice %6 {offsets = [0, 48], sizes = [16, 16], strides = [1, 1]} : vector<16x128xf32> to vector<16x16xf32>
    %55 = vector.extract_strided_slice %7 {offsets = [0, 48], sizes = [24, 16], strides = [1, 1]} : vector<24x128xf32> to vector<24x16xf32>
    %56 = vector.extract_strided_slice %8 {offsets = [0, 48], sizes = [24, 16], strides = [1, 1]} : vector<24x128xf32> to vector<24x16xf32>
    %cst_21 = arith.constant dense<0.000000e+00> : vector<16x24xf32>
    %57 = tpu.matmul %54, %55, %cst_21 {dimension_numbers = #tpu.dot_dimension_numbers<[1], [1], [0], [0], [0, 0, 1, 0], [], []>} : vector<16x16xf32>, vector<24x16xf32>, vector<16x24xf32> -> vector<16x24xf32>
    %cst_22 = arith.constant dense<0xFF800000> : vector<16xf32>
    %58 = vector.multi_reduction <maximumf>, %57, %cst_22 [1] : vector<16x24xf32> to vector<16xf32>
    %59 = vector.shape_cast %58 : vector<16xf32> to vector<16x1xf32>
    %60 = vector.broadcast %59 : vector<16x1xf32> to vector<16x24xf32>
    %61 = arith.subf %57, %60 : vector<16x24xf32>
    %62 = math.exp %61 : vector<16x24xf32>
    %cst_23 = arith.constant dense<0.000000e+00> : vector<16xf32>
    %63 = vector.multi_reduction <add>, %62, %cst_23 [1] : vector<16x24xf32> to vector<16xf32>
    %64 = vector.shape_cast %63 : vector<16xf32> to vector<16x1xf32>
    %65 = tpu.reciprocal %64 {approx = true} : vector<16x1xf32> -> vector<16x1xf32>
    %66 = vector.broadcast %65 : vector<16x1xf32> to vector<16x24xf32>
    %67 = arith.mulf %62, %66 : vector<16x24xf32>
    %cst_24 = arith.constant dense<0.000000e+00> : vector<16x16xf32>
    %68 = tpu.matmul %67, %56, %cst_24 {dimension_numbers = #tpu.dot_dimension_numbers<[1], [0], [0], [1], [0, 0, 1, 1], [], []>} : vector<16x24xf32>, vector<24x16xf32>, vector<16x16xf32> -> vector<16x16xf32>
    %69 = vector.extract_strided_slice %6 {offsets = [0, 64], sizes = [16, 16], strides = [1, 1]} : vector<16x128xf32> to vector<16x16xf32>
    %70 = vector.extract_strided_slice %7 {offsets = [0, 64], sizes = [24, 16], strides = [1, 1]} : vector<24x128xf32> to vector<24x16xf32>
    %71 = vector.extract_strided_slice %8 {offsets = [0, 64], sizes = [24, 16], strides = [1, 1]} : vector<24x128xf32> to vector<24x16xf32>
    %cst_25 = arith.constant dense<0.000000e+00> : vector<16x24xf32>
    %72 = tpu.matmul %69, %70, %cst_25 {dimension_numbers = #tpu.dot_dimension_numbers<[1], [1], [0], [0], [0, 0, 1, 0], [], []>} : vector<16x16xf32>, vector<24x16xf32>, vector<16x24xf32> -> vector<16x24xf32>
    %cst_26 = arith.constant dense<0xFF800000> : vector<16xf32>
    %73 = vector.multi_reduction <maximumf>, %72, %cst_26 [1] : vector<16x24xf32> to vector<16xf32>
    %74 = vector.shape_cast %73 : vector<16xf32> to vector<16x1xf32>
    %75 = vector.broadcast %74 : vector<16x1xf32> to vector<16x24xf32>
    %76 = arith.subf %72, %75 : vector<16x24xf32>
    %77 = math.exp %76 : vector<16x24xf32>
    %cst_27 = arith.constant dense<0.000000e+00> : vector<16xf32>
    %78 = vector.multi_reduction <add>, %77, %cst_27 [1] : vector<16x24xf32> to vector<16xf32>
    %79 = vector.shape_cast %78 : vector<16xf32> to vector<16x1xf32>
    %80 = tpu.reciprocal %79 {approx = true} : vector<16x1xf32> -> vector<16x1xf32>
    %81 = vector.broadcast %80 : vector<16x1xf32> to vector<16x24xf32>
    %82 = arith.mulf %77, %81 : vector<16x24xf32>
    %cst_28 = arith.constant dense<0.000000e+00> : vector<16x16xf32>
    %83 = tpu.matmul %82, %71, %cst_28 {dimension_numbers = #tpu.dot_dimension_numbers<[1], [0], [0], [1], [0, 0, 1, 1], [], []>} : vector<16x24xf32>, vector<24x16xf32>, vector<16x16xf32> -> vector<16x16xf32>
    %84 = vector.extract_strided_slice %6 {offsets = [0, 80], sizes = [16, 16], strides = [1, 1]} : vector<16x128xf32> to vector<16x16xf32>
    %85 = vector.extract_strided_slice %7 {offsets = [0, 80], sizes = [24, 16], strides = [1, 1]} : vector<24x128xf32> to vector<24x16xf32>
    %86 = vector.extract_strided_slice %8 {offsets = [0, 80], sizes = [24, 16], strides = [1, 1]} : vector<24x128xf32> to vector<24x16xf32>
    %cst_29 = arith.constant dense<0.000000e+00> : vector<16x24xf32>
    %87 = tpu.matmul %84, %85, %cst_29 {dimension_numbers = #tpu.dot_dimension_numbers<[1], [1], [0], [0], [0, 0, 1, 0], [], []>} : vector<16x16xf32>, vector<24x16xf32>, vector<16x24xf32> -> vector<16x24xf32>
    %cst_30 = arith.constant dense<0xFF800000> : vector<16xf32>
    %88 = vector.multi_reduction <maximumf>, %87, %cst_30 [1] : vector<16x24xf32> to vector<16xf32>
    %89 = vector.shape_cast %88 : vector<16xf32> to vector<16x1xf32>
    %90 = vector.broadcast %89 : vector<16x1xf32> to vector<16x24xf32>
    %91 = arith.subf %87, %90 : vector<16x24xf32>
    %92 = math.exp %91 : vector<16x24xf32>
    %cst_31 = arith.constant dense<0.000000e+00> : vector<16xf32>
    %93 = vector.multi_reduction <add>, %92, %cst_31 [1] : vector<16x24xf32> to vector<16xf32>
    %94 = vector.shape_cast %93 : vector<16xf32> to vector<16x1xf32>
    %95 = tpu.reciprocal %94 {approx = true} : vector<16x1xf32> -> vector<16x1xf32>
    %96 = vector.broadcast %95 : vector<16x1xf32> to vector<16x24xf32>
    %97 = arith.mulf %92, %96 : vector<16x24xf32>
    %cst_32 = arith.constant dense<0.000000e+00> : vector<16x16xf32>
    %98 = tpu.matmul %97, %86, %cst_32 {dimension_numbers = #tpu.dot_dimension_numbers<[1], [0], [0], [1], [0, 0, 1, 1], [], []>} : vector<16x24xf32>, vector<24x16xf32>, vector<16x16xf32> -> vector<16x16xf32>
    %99 = vector.extract_strided_slice %6 {offsets = [0, 96], sizes = [16, 16], strides = [1, 1]} : vector<16x128xf32> to vector<16x16xf32>
    %100 = vector.extract_strided_slice %7 {offsets = [0, 96], sizes = [24, 16], strides = [1, 1]} : vector<24x128xf32> to vector<24x16xf32>
    %101 = vector.extract_strided_slice %8 {offsets = [0, 96], sizes = [24, 16], strides = [1, 1]} : vector<24x128xf32> to vector<24x16xf32>
    %cst_33 = arith.constant dense<0.000000e+00> : vector<16x24xf32>
    %102 = tpu.matmul %99, %100, %cst_33 {dimension_numbers = #tpu.dot_dimension_numbers<[1], [1], [0], [0], [0, 0, 1, 0], [], []>} : vector<16x16xf32>, vector<24x16xf32>, vector<16x24xf32> -> vector<16x24xf32>
    %cst_34 = arith.constant dense<0xFF800000> : vector<16xf32>
    %103 = vector.multi_reduction <maximumf>, %102, %cst_34 [1] : vector<16x24xf32> to vector<16xf32>
    %104 = vector.shape_cast %103 : vector<16xf32> to vector<16x1xf32>
    %105 = vector.broadcast %104 : vector<16x1xf32> to vector<16x24xf32>
    %106 = arith.subf %102, %105 : vector<16x24xf32>
    %107 = math.exp %106 : vector<16x24xf32>
    %cst_35 = arith.constant dense<0.000000e+00> : vector<16xf32>
    %108 = vector.multi_reduction <add>, %107, %cst_35 [1] : vector<16x24xf32> to vector<16xf32>
    %109 = vector.shape_cast %108 : vector<16xf32> to vector<16x1xf32>
    %110 = tpu.reciprocal %109 {approx = true} : vector<16x1xf32> -> vector<16x1xf32>
    %111 = vector.broadcast %110 : vector<16x1xf32> to vector<16x24xf32>
    %112 = arith.mulf %107, %111 : vector<16x24xf32>
    %cst_36 = arith.constant dense<0.000000e+00> : vector<16x16xf32>
    %113 = tpu.matmul %112, %101, %cst_36 {dimension_numbers = #tpu.dot_dimension_numbers<[1], [0], [0], [1], [0, 0, 1, 1], [], []>} : vector<16x24xf32>, vector<24x16xf32>, vector<16x16xf32> -> vector<16x16xf32>
    %114 = vector.extract_strided_slice %6 {offsets = [0, 112], sizes = [16, 16], strides = [1, 1]} : vector<16x128xf32> to vector<16x16xf32>
    %115 = vector.extract_strided_slice %7 {offsets = [0, 112], sizes = [24, 16], strides = [1, 1]} : vector<24x128xf32> to vector<24x16xf32>
    %116 = vector.extract_strided_slice %8 {offsets = [0, 112], sizes = [24, 16], strides = [1, 1]} : vector<24x128xf32> to vector<24x16xf32>
    %cst_37 = arith.constant dense<0.000000e+00> : vector<16x24xf32>
    %117 = tpu.matmul %114, %115, %cst_37 {dimension_numbers = #tpu.dot_dimension_numbers<[1], [1], [0], [0], [0, 0, 1, 0], [], []>} : vector<16x16xf32>, vector<24x16xf32>, vector<16x24xf32> -> vector<16x24xf32>
    %cst_38 = arith.constant dense<0xFF800000> : vector<16xf32>
    %118 = vector.multi_reduction <maximumf>, %117, %cst_38 [1] : vector<16x24xf32> to vector<16xf32>
    %119 = vector.shape_cast %118 : vector<16xf32> to vector<16x1xf32>
    %120 = vector.broadcast %119 : vector<16x1xf32> to vector<16x24xf32>
    %121 = arith.subf %117, %120 : vector<16x24xf32>
    %122 = math.exp %121 : vector<16x24xf32>
    %cst_39 = arith.constant dense<0.000000e+00> : vector<16xf32>
    %123 = vector.multi_reduction <add>, %122, %cst_39 [1] : vector<16x24xf32> to vector<16xf32>
    %124 = vector.shape_cast %123 : vector<16xf32> to vector<16x1xf32>
    %125 = tpu.reciprocal %124 {approx = true} : vector<16x1xf32> -> vector<16x1xf32>
    %126 = vector.broadcast %125 : vector<16x1xf32> to vector<16x24xf32>
    %127 = arith.mulf %122, %126 : vector<16x24xf32>
    %cst_40 = arith.constant dense<0.000000e+00> : vector<16x16xf32>
    %128 = tpu.matmul %127, %116, %cst_40 {dimension_numbers = #tpu.dot_dimension_numbers<[1], [0], [0], [1], [0, 0, 1, 1], [], []>} : vector<16x24xf32>, vector<24x16xf32>, vector<16x16xf32> -> vector<16x16xf32>
    %129 = tpu.concatenate %23, %38, %53, %68, %83, %98, %113, %128 in 1 : vector<16x16xf32>, vector<16x16xf32>, vector<16x16xf32>, vector<16x16xf32>, vector<16x16xf32>, vector<16x16xf32>, vector<16x16xf32>, vector<16x16xf32> -> vector<16x128xf32>
    %c0_41 = arith.constant 0 : index
    %c0_42 = arith.constant 0 : index
    %130 = vector.load %arg8[%c0_41, %c0_42] : memref<128x128xf32, #tpu.memory_space<vmem>>, vector<128x128xf32>
    %cst_43 = arith.constant dense<0.000000e+00> : vector<16x128xf32>
    %131 = tpu.matmul %129, %130, %cst_43 {dimension_numbers = #tpu.dot_dimension_numbers<[1], [0], [0], [1], [0, 0, 1, 1], [], []>} : vector<16x128xf32>, vector<128x128xf32>, vector<16x128xf32> -> vector<16x128xf32>
    %c0_44 = arith.constant 0 : index
    %c0_45 = arith.constant 0 : index
    %132 = vector.load %arg9[%c0_44, %c0_45] : memref<1x128xf32, #tpu.memory_space<vmem>>, vector<1x128xf32>
    %133 = vector.broadcast %132 : vector<1x128xf32> to vector<16x128xf32>
    %134 = arith.addf %131, %133 : vector<16x128xf32>
    %c0_46 = arith.constant 0 : index
    %c0_47 = arith.constant 0 : index
    %c0_48 = arith.constant 0 : index
    %135 = vector.load %arg10[%c0_46, %c0_47, %c0_48] : memref<1x16x128xf32, #tpu.memory_space<vmem>>, vector<1x16x128xf32>
    %136 = vector.shape_cast %135 : vector<1x16x128xf32> to vector<16x128xf32>
    %137 = vector.shape_cast %134 : vector<16x128xf32> to vector<1x16x128xf32>
    tpu.vector_store %arg10[%c0_46, %c0_47, %c0_48], %137 {strides = array<i32>} : memref<1x16x128xf32, #tpu.memory_space<vmem>>, vector<1x16x128xf32>,
    return
  }
  func.func @transform_0(%arg0: i32, %arg1: i32) -> (i32, i32, i32) {
    %c0_i32 = arith.constant 0 : i32
    %c0_i32_0 = arith.constant 0 : i32
    return %arg0, %arg1, %c0_i32 : i32, i32, i32
  }
  func.func @transform_1(%arg0: i32, %arg1: i32) -> (i32, i32, i32) {
    %c0_i32 = arith.constant 0 : i32
    %c0_i32_0 = arith.constant 0 : i32
    %c0_i32_1 = arith.constant 0 : i32
    return %arg0, %c0_i32, %c0_i32_0 : i32, i32, i32
  }
  func.func @transform_2(%arg0: i32, %arg1: i32) -> (i32, i32, i32) {
    %c0_i32 = arith.constant 0 : i32
    %c0_i32_0 = arith.constant 0 : i32
    %c0_i32_1 = arith.constant 0 : i32
    return %arg0, %c0_i32, %c0_i32_0 : i32, i32, i32
  }
  func.func @transform_3(%arg0: i32, %arg1: i32) -> (i32, i32) {
    %c0_i32 = arith.constant 0 : i32
    %c0_i32_0 = arith.constant 0 : i32
    %c0_i32_1 = arith.constant 0 : i32
    return %c0_i32, %c0_i32_0 : i32, i32
  }
  func.func @transform_4(%arg0: i32, %arg1: i32) -> (i32, i32) {
    %c0_i32 = arith.constant 0 : i32
    %c0_i32_0 = arith.constant 0 : i32
    %c0_i32_1 = arith.constant 0 : i32
    return %c0_i32, %c0_i32_0 : i32, i32
  }
  func.func @transform_5(%arg0: i32, %arg1: i32) -> (i32, i32) {
    %c0_i32 = arith.constant 0 : i32
    %c0_i32_0 = arith.constant 0 : i32
    %c0_i32_1 = arith.constant 0 : i32
    return %c0_i32, %c0_i32_0 : i32, i32
  }
  func.func @transform_6(%arg0: i32, %arg1: i32) -> (i32, i32) {
    %c0_i32 = arith.constant 0 : i32
    %c0_i32_0 = arith.constant 0 : i32
    %c0_i32_1 = arith.constant 0 : i32
    return %c0_i32, %c0_i32_0 : i32, i32
  }
  func.func @transform_7(%arg0: i32, %arg1: i32) -> (i32, i32) {
    %c0_i32 = arith.constant 0 : i32
    %c0_i32_0 = arith.constant 0 : i32
    %c0_i32_1 = arith.constant 0 : i32
    return %c0_i32, %c0_i32_0 : i32, i32
  }
  func.func @transform_8(%arg0: i32, %arg1: i32) -> (i32, i32, i32) {
    %c0_i32 = arith.constant 0 : i32
    %c0_i32_0 = arith.constant 0 : i32
    return %arg0, %arg1, %c0_i32 : i32, i32, i32
  }
}

</mosaic_0001>

<bundles_post_ra>
// kernel: tpu_custom_call.1
= control target key start
LH: loop header
LB: loop body
LE: loop exit
PB: predicated region body
PF: predicated region fallthrough
CT: control target
= control target key end

     0   :  { %s4554_s0 = inlined_call_operand.hbm [shape: f32[2,16,128], index: 0, kind: input, shape index: {}]   ;;  %s4555_s1 = inlined_call_operand.hbm [shape: f32[2,24,128], index: 1, kind: input, shape index: {}]   ;;  %s4556_s2 = inlined_call_operand.hbm [shape: f32[2,24,128], index: 2, kind: input, shape index: {}]   ;;  %s4557_s3 = inlined_call_operand.hbm [shape: f32[128,128], index: 3, kind: input, shape index: {}]   ;;  %s4558_s4 = inlined_call_operand.hbm [shape: f32[128,128], index: 4, kind: input, shape index: {}]   ;;  %s4559_s5 = inlined_call_operand.hbm [shape: f32[128,128], index: 5, kind: input, shape index: {}]   ;;  %s4560_s6 = inlined_call_operand.hbm [shape: f32[128,128], index: 6, kind: input, shape index: {}]   ;;  %s4561_s7 = inlined_call_operand.vmem [shape: f32[1,128], index: 7, kind: input, shape index: {}]   ;;  %s4562_s8 = inlined_call_operand.hbm [shape: f32[2,16,128], index: 8, kind: output, shape index: {}]  }
   0x1   :  { %4578 = sst [smem:[#allocation28_spill]] %s4555_s1 }
   0x2   :  { %4579 = sst [smem:[#allocation29_spill]] %s4557_s3 }
   0x3   :  { %4580 = sst [smem:[#allocation30_spill]] %s4558_s4 }
   0x4   :  { %4581 = sst [smem:[#allocation31_spill]] %s4559_s5 }
   0x5   :  { %4582 = sst [smem:[#allocation32_spill]] %s4560_s6 }
   0x6   :  { %13 = vsyncpa [#allocation5], 0 }
   0x7   :  { %15 = vsyncpa [#allocation5 + $0x1], 0 }
   0x8   :  { %16 = vsyncpa [#allocation8], 0 }
   0x9   :  { %18 = vsyncpa [#allocation8 + $0x1], 0 }
   0xa   :  { %19 = vsyncpa [#allocation11], 0 }
   0xb   :  { %20 = vsyncpa [#allocation14], 0 }
   0xc   :  { %21 = vsyncpa [#allocation6], 0 }
   0xd   :  { %23 = vsyncpa [#allocation6 + $0x1], 0  ;;  %s3905_s27 = smov 0   ;;  %s3907_s28 = smov 0  }
   0xe   :  { %s3909_s29 = smov 0   ;;  %s3911_s30 = smov 0  }
   0xf   :  { %s3913_s9 = smov 0   ;;  %s3915_s10 = smov 0  }
  0x10 LB: > { %4583 = sst [smem:[#allocation22_spill]] %s3817_s27  ;;  %s3936_s11 = sadd.s32 4294967295, %s3837_s10   ;;  %s3837_s10 = sphi %s3915_s10, %s29_s10   ;;  %s3833_s9 = sphi %s3913_s9, %s4623_s9   ;;  %s3829_s30 = sphi %s3911_s30, %s4622_s30   ;;  %s3825_s29 = sphi %s3909_s29, %s4618_s29   ;;  %s3821_s28 = sphi %s3907_s28, %s4621_s28   ;;  %s3817_s27 = sphi %s3905_s27, %s4620_s27  }
  0x11   : > { %4584 = sst [smem:[#allocation23_spill]] %s3825_s29  ;;  %s2794_s12 = sadd.s32 4294967294, %s3837_s10  }
  0x12   : > { %4585 = sst [smem:[#allocation24_spill]] %s3837_s10  ;;  %p63_p0 = scmp.ne.s32.totalorder %s3821_s28, %s3817_s27 }
  0x13   : > { %p4563_p1 = scmp.eq.s32.totalorder %s3936_s11, 0  ;;  %p246_p2 = scmp.eq.s32.totalorder %s3936_s11, 1 }
  0x14   : > { %p252_p3 = scmp.eq.s32.totalorder %s2794_s12, 1  ;;  %p2795_p5 = scmp.ge.s32.totalorder %s3837_s10, 1 }
  0x15   : > { %p3945_p4 = por %p4563_p1, %p63_p0  ;;  %p259_p7 = scmp.lt.s32.totalorder %s3837_s10, 3 }
  0x16   : > { %p3950_p6 = por %p252_p3, %p63_p0  ;;  %s3839_s16 = smov [#allocation10]  }
  0x17   : > { %p3955_p8 = pnand %p2795_p5, %p259_p7  ;;  %s271_s17 = sshll.u32 %s3839_s16, 4  ;;  %s272_s17 = int_to_ptr.vmem [resolvable:$true] %s271_s17 }
  0x18   : > { %s4587_s14 = scalar_select %p3950_p6, 1, 0 }
  0x19   : > { %p3356_p9 = pneg %p3955_p8  ;;  %s3840_s19 = smov [#allocation13]  }
  0x1a   : > { %4588 = sst [smem:[#allocation25_spill]] %s4587_s14  ;;  %s297_s20 = sshll.u32 %s3840_s19, 4  ;;  %s298_s20 = int_to_ptr.vmem [resolvable:$true] %s297_s20 }
  0x1b   : > { %p3964_p11 = pnand %p3356_p9, %p4563_p1  ;;  %s3568_s21 = scalar_lea.vmem %s272_s17, 2048 }
  0x1c   : > { %p3569_p13 = scmp.ne.s32.totalorder %s272_s17, %s3568_s21  ;;  %p3576_p5 = scmp.lt.s32.totalorder %s272_s17, %s272_s17 }
  0x1d   : > { %p4571_p12 = pneg %p3964_p11  ;;  %p3577_p7 = scmp.lt.s32.totalorder %s3568_s21, %s3568_s21 }
  0x1f   : > { %p3571_p0 = pnand %p3569_p13, %p4571_p12  ;;  %p3578_p10 = por %p3577_p7, %p3576_p5 }
  0x21   : > { %p3572_p3 = pneg %p3571_p0 }
  0x23   : > { %p3579_p9 = pnand %p3578_p10, %p3572_p3 }
  0x25   : > { %3582 = shalt.err (!%p3579_p9)
}
  0x26   : > { %s4564_s22 = smov 128   ;;  %s4566_s23 = smov 8  }
  0x27   : > { %s4591_s3 = sld [smem:[#allocation29_spill]]  ;;  %s3594_s26 = scalar_lea.vmem %s298_s20, 2048 }
  0x28   : > { %p3595_p13 = scmp.ne.s32.totalorder %s298_s20, %s3594_s26  ;;  %p3602_p10 = scmp.lt.s32.totalorder %s298_s20, %s298_s20 }
  0x29   : > { %p3603_p3 = scmp.lt.s32.totalorder %s3594_s26, %s3594_s26 }
  0x2a   : > { %p3597_p0 = pnand %p3595_p13, %p4571_p12 }
  0x2b   : > { %p3604_p7 = por %p3603_p3, %p3602_p10 }
  0x2c   : > { %p3598_p5 = pneg %p3597_p0 }
  0x2d   : > { %3359 = dma.hbm_to_vmem [thread:$0]  (!%p3964_p11), %s4591_s3, 2048, %s272_s17, [#allocation11], %s4564_s22, %s4564_s22, %s4566_s23  }
  0x2e   : > { %p3605_p9 = pnand %p3604_p7, %p3598_p5 }
  0x30   : > { %3608 = shalt.err (!%p3605_p9)
}
  0x31   : > { %s4592_s5 = sld [smem:[#allocation31_spill]]  ;;  %s41_s17 = sadd.s32 1, %s3833_s9 }
  0x32   : > { %s50_s19 = sadd.s32 1, %s3825_s29  ;;  %p43_p13 = scmp.ge.s32.totalorder %s41_s17, 2 }
  0x33   : > { %p57_p0 = scmp.ne.s32.totalorder %s3825_s29, %s3821_s28  ;;  %p58_p5 = scmp.eq.s32.totalorder %s3837_s10, 0 }
  0x34   : > { %p3387_p10 = scmp.lt.s32.totalorder %s3837_s10, 2  ;;  %s4625_s17 = smov (%p43_p13, %s41_s17), 0 }
  0x35   : > { %4593 = sst [smem:[#allocation26_spill]] %s4625_s17  ;;  %p59_p3 = por %p58_p5, %p57_p0 }
  0x36   : > { %p4002_p7 = por %p246_p2, %p57_p0  ;;  %s45_s24 = ssub.s32 %s3833_s9, %s4625_s17 }
  0x37   : > { %3365 = dma.hbm_to_vmem [thread:$0]  (!%p3964_p11), %s4592_s5, 2048, %s298_s20, [#allocation14], %s4564_s22, %s4564_s22, %s4566_s23  }
  0x38   : > { %s4009_s20 = sand.u32 1, %s3825_s29   ;;  %p48_p9 = scmp.eq.s32.totalorder %s45_s24, 0 }
  0x39   : > { %p4011_p1 = pnand %p3387_p10, %p59_p3  ;;  %s350_s26 = sand.u32 1, %s3837_s10  }
  0x3a   : > { %s4572_s12 = smul.u32 24, %s4009_s20  ;;  %s4597_s1 = sld [smem:[#allocation28_spill]] }
  0x3b   : > { %s4018_s16 = scalar_select %p48_p9, %s3825_s29, %s50_s19  }
  0x3c   : > { %s4573_s22 = smul.u32 384, %s3833_s9  ;;  %s354_s23 = scalar_lea.vmem [#allocation7], %s4572_s12 }
  0x3d   : > { %4596 = sst [smem:[#allocation27_spill]] %s4018_s16  ;;  %s361_s3 = sshll.u32 %s354_s23, 4  ;;  %s362_s3 = int_to_ptr.vmem [resolvable:$true] %s361_s3 }
  0x3e   : > { %s4028_s24 = scalar_lea.sflag [#allocation8], %s350_s26  ;;  %p4574_p2 = pneg %p4011_p1 }
  0x3f   : > { %s3622_s27 = scalar_lea.vmem %s362_s3, 384  ;;  %s3843_s19 = smov [#allocation7]  }
  0x40   : > { %s360_s14 = scalar_lea.hbm %s4597_s1, %s4573_s22  ;;  %p3623_p13 = scmp.ne.s32.totalorder %s362_s3, %s3622_s27 }
  0x41   : > { %s3627_s16 = sshll.u32 %s3843_s19, 4  ;;  %s3628_s16 = int_to_ptr.vmem [resolvable:$false] %s3627_s16 }
  0x42   : > { %p3625_p0 = pnand %p3623_p13, %p4574_p2  ;;  %s3629_s23 = scalar_lea.vmem %s3628_s16, 768 }
  0x43   : > { %p3630_p10 = scmp.lt.s32.totalorder %s362_s3, %s3628_s16  ;;  %p3631_p3 = scmp.lt.s32.totalorder %s3629_s23, %s3622_s27 }
  0x44   : > { %p3626_p5 = pneg %p3625_p0 }
  0x45   : > { %p3632_p9 = por %p3631_p3, %p3630_p10 }
  0x47   : > { %p3633_p12 = pnand %p3632_p9, %p3626_p5 }
  0x49   : > { %3636 = shalt.err (!%p3633_p12)
}
  0x4a   : > { %s4598_s5 = smov 8   ;;  %s4599_s17 = smov 128  }
  0x4b   : > { %3375 = dma.hbm_to_vmem [thread:$0]  (!%p4011_p1), %s360_s14, 384, %s362_s3, %s4028_s24, %s4599_s17, %s4599_s17, %s4598_s5  }
  0x4c   : > { %s3844_s26 = smov [#allocation12]   ;;  %s3845_s22 = smov [#allocation15]  }
  0x4d   : > { %s284_s12 = sshll.u32 %s3844_s26, 4  ;;  %s310_s19 = sshll.u32 %s3845_s22, 4  ;;  %s285_s12 = int_to_ptr.vmem [resolvable:$true] %s284_s12  ;;  %s311_s19 = int_to_ptr.vmem [resolvable:$true] %s310_s19 }
  0x4e   : > { %s3648_s1 = scalar_lea.vmem %s285_s12, 2048  ;;  %p4600_p0 = pneg %p3964_p11 }
  0x4f   : > { %p3649_p13 = scmp.ne.s32.totalorder %s285_s12, %s3648_s1  ;;  %p3656_p12 = scmp.lt.s32.totalorder %s285_s12, %s285_s12 }
  0x50   : > { %p3657_p3 = scmp.lt.s32.totalorder %s3648_s1, %s3648_s1 }
  0x51   : > { %p3651_p10 = pnand %p3649_p13, %p4600_p0 }
  0x52   : > { %p3658_p9 = por %p3657_p3, %p3656_p12 }
  0x53   : > { %p3652_p5 = pneg %p3651_p10 }
  0x55   : > { %p3659_p2 = pnand %p3658_p9, %p3652_p5 }
  0x57   : > { %3662 = shalt.err (!%p3659_p2)
}
  0x58   : > { %s4601_s4 = sld [smem:[#allocation30_spill]]  ;;  %s3674_s14 = scalar_lea.vmem %s311_s19, 2048 }
  0x59   : > { %p3675_p6 = scmp.ne.s32.totalorder %s311_s19, %s3674_s14  ;;  %p4602_p13 = pmov %p4600_p0 }
  0x5a   : > { %p3682_p12 = scmp.lt.s32.totalorder %s311_s19, %s311_s19  ;;  %p3683_p5 = scmp.lt.s32.totalorder %s3674_s14, %s3674_s14 }
  0x5b   : > { %p3677_p0 = pnand %p3675_p6, %p4602_p13 }
  0x5c   : > { %p3684_p2 = por %p3683_p5, %p3682_p12 }
  0x5d   : > { %p3678_p10 = pneg %p3677_p0 }
  0x5e   : > { %3362 = dma.hbm_to_vmem [thread:$0]  (!%p3964_p11), %s4601_s4, 2048, %s285_s12, [#allocation11], %s4599_s17, %s4599_s17, %s4598_s5  }
  0x5f   : > { %p3685_p3 = pnand %p3684_p2, %p3678_p10 }
  0x61   : > { %3688 = shalt.err (!%p3685_p3)
}
  0x62   : > { %s4603_s6 = sld [smem:[#allocation32_spill]]  ;;  %s2801_s12 = sshll.u32 %s4009_s20, 4 }
  0x63   : > { %s2875_s16 = sshll.u32 %s3833_s9, 8  ;;  %s331_s27 = scalar_lea.vmem [#allocation4], %s2801_s12 }
  0x64   : > { %s339_s3 = scalar_lea.hbm %s4554_s0, %s2875_s16  ;;  %s340_s18 = sshll.u32 %s331_s27, 4  ;;  %s341_s18 = int_to_ptr.vmem [resolvable:$true] %s340_s18 }
  0x65   : > { %s4604_s14 = smul.u32 384, %s3833_s9  ;;  %s328_s22 = scalar_lea.sflag [#allocation5], %s4009_s20 }
  0x66   : > { %s3702_s10 = scalar_lea.vmem %s341_s18, 256 }
  0x67   : > { %s4073_s1 = scalar_lea.hbm %s4556_s2, %s4604_s14  ;;  %p3703_p6 = scmp.ne.s32.totalorder %s341_s18, %s3702_s10 }
  0x68   : > { %3368 = dma.hbm_to_vmem [thread:$0]  (!%p3964_p11), %s4603_s6, 2048, %s311_s19, [#allocation14], %s4599_s17, %s4599_s17, %s4598_s5  }
  0x69   : > { %p4605_p11 = pneg %p4011_p1  ;;  %s3846_s19 = smov [#allocation4]  }
  0x6a   : > { %s3707_s6 = sshll.u32 %s3846_s19, 4  ;;  %s3708_s6 = int_to_ptr.vmem [resolvable:$false] %s3707_s6 }
  0x6b   : > { %p3705_p9 = pnand %p3703_p6, %p4605_p11  ;;  %s3709_s16 = scalar_lea.vmem %s3708_s6, 512 }
  0x6c   : > { %p3710_p0 = scmp.lt.s32.totalorder %s341_s18, %s3708_s6  ;;  %p3711_p10 = scmp.lt.s32.totalorder %s3709_s16, %s3702_s10 }
  0x6d   : > { %p3706_p13 = pneg %p3705_p9 }
  0x6e   : > { %p3712_p12 = por %p3711_p10, %p3710_p0 }
  0x70   : > { %p3713_p5 = pnand %p3712_p12, %p3706_p13 }
  0x72   : > { %3716 = shalt.err (!%p3713_p5)
}
  0x73   : > { %3372 = dma.hbm_to_vmem [thread:$0]  (!%p4011_p1), %s339_s3, 256, %s341_s18, %s328_s22, %s4599_s17, %s4599_s17, %s4598_s5  }
  0x74   : > { %s4606_s4 = smul.u32 24, %s4009_s20  ;;  %p4607_p3 = pmov %p4605_p11 }
  0x75   : > { %s3847_s6 = smov [#allocation9]  }
  0x76   : > { %s375_s29 = scalar_lea.vmem [#allocation9], %s4606_s4  ;;  %s3735_s10 = sshll.u32 %s3847_s6, 4  ;;  %s3736_s10 = int_to_ptr.vmem [resolvable:$false] %s3735_s10 }
  0x77   : > { %s382_s12 = sshll.u32 %s375_s29, 4  ;;  %s3737_s26 = scalar_lea.vmem %s3736_s10, 768  ;;  %s383_s12 = int_to_ptr.vmem [resolvable:$true] %s382_s12 }
  0x78   : > { %s3730_s23 = scalar_lea.vmem %s383_s12, 384  ;;  %p3738_p9 = scmp.lt.s32.totalorder %s383_s12, %s3736_s10 }
  0x79   : > { %p3731_p2 = scmp.ne.s32.totalorder %s383_s12, %s3730_s23  ;;  %p3739_p13 = scmp.lt.s32.totalorder %s3737_s26, %s3730_s23 }
  0x7b   : > { %p3733_p6 = pnand %p3731_p2, %p4607_p3  ;;  %p3740_p0 = por %p3739_p13, %p3738_p9 }
  0x7d   : > { %p3734_p11 = pneg %p3733_p6 }
  0x7f   : > { %p3741_p10 = pnand %p3740_p0, %p3734_p11 }
  0x81   : > { %3744 = shalt.err (!%p3741_p10)
}
  0x82   : > { %3378 = dma.hbm_to_vmem [thread:$0]  (!%p4011_p1), %s4073_s1, 384, %s383_s12, %s4028_s24, %s4599_s17, %s4599_s17, %s4598_s5  }
  0x83   : > { %394 = sbr.rel (%p3955_p8) target bundleno = 5106 (0x13f2), region = 52  ;;  %s4099_s20 = sand.u32 (!%p3955_p8), 1, %s3821_s28  }
  0x84   : > { %s2807_s3 = sshll.u32 (!%p3955_p8), %s4099_s20, 4  ;;  %s397_s27 = scalar_lea.sflag (!%p3955_p8), [#allocation5], %s4099_s20 }
  0x85   : > { %s4105_s25 = scalar_lea.vmem (!%p3955_p8), [#allocation4], %s2807_s3 }
  0x88   : > { %3796 = dma.done.wait (%p3945_p4), %s397_s27, 256  }
  0x89   : > { %3798 = vsyncadd (%p3945_p4), %s397_s27, 4294967040  ;;  %s405_s15 = sand.u32 1, %s3936_s11   ;;  %s3331_s24 = smul.u32 24, %s4099_s20 }
  0x8a   : > { %s406_s5 = scalar_lea.sflag [#allocation8], %s405_s15 }
  0x8b   : > { %s4113_s17 = scalar_lea.vmem [#allocation7], %s3331_s24 }
  0x8c   : > { %3800 = dma.done.wait (%p3945_p4), %s406_s5, 768  }
  0x8d   : > { %3802 = vsyncadd (%p3945_p4), %s406_s5, 4294966528  ;;  %s4119_s18 = scalar_lea.vmem [#allocation9], %s3331_s24  ;;  %p4608_p1 = scmp.eq.s32.totalorder %s3936_s11, 0 }
  0x8f   : > { %3804 = dma.done.wait (%p4608_p1), [#allocation11], 4096   ;;  %p4609_p8 = pmov %p4608_p1 }
  0x90   : > { %p4610_p12 = pmov %p4608_p1 }
  0x91   : > { %3806 = vsyncadd (%p4609_p8), [#allocation11], 4294963200 }
  0x92   : > { %3808 = dma.done.wait (%p4610_p12), [#allocation14], 4096   ;;  %p4611_p5 = pmov %p4608_p1 }
  0x93   : > { %v3848_v0 = vmov 0.0   ;;  %vm3849_vm0 = vmmov 0   ;;  %v501_v1 = vld [vmem:[#allocation12 + $0x78] sm:$0xff]  ;;  %v500_v2 = vld [vmem:[#allocation12 + $0x70] sm:$0xff]  ;;  %v499_v3 = vld [vmem:[#allocation12 + $0x68] sm:$0xff]  ;;  %s3850_s11 = smov 112  }
  0x94   : > { %3810 = vsyncadd (%p4611_p5), [#allocation14], 4294963200  ;;  %3031 = vmatprep.subr.mxu0 %v3848_v0  ;;  %3063 = vmatprep.mubr.msk.f32.mxu0 %vm3849_vm0, %v3848_v0  ;;  %v498_v4 = vld [vmem:[#allocation12 + $0x60] sm:$0xff]  ;;  %v497_v5 = vld [vmem:[#allocation12 + $0x58] sm:$0xff]  ;;  %vm786_vm1 = vcmask 130048   ;;  %vm877_vm2 = vcmask 195584  }
  0x95   : > { %3072 = vmatprep.subr.mxu1 %v3848_v0  ;;  %3104 = vmatprep.mubr.msk.f32.mxu1 %vm3849_vm0, %v3848_v0  ;;  %v496_v6 = vld [vmem:[#allocation12 + $0x50] sm:$0xff]  ;;  %v495_v7 = vld [vmem:[#allocation12 + $0x48] sm:$0xff]  ;;  %v494_v8 = vld [vmem:[#allocation12 + $0x40] sm:$0xff]  ;;  %s3851_s13 = smov 96   ;;  %s3852_s14 = smov 80   ;;  %vm2491_vm3 = vcmask 261120  }
  0x96   : > { %3032 = vmatpush3.msra.mxu0 %v501_v1  ;;  %v603_v9 = vld [vmem:[#allocation13 + $0x78] sm:$0xff]  ;;  %v602_v10 = vld [vmem:[#allocation13 + $0x70] sm:$0xff]  ;;  %v601_v12 = vld [vmem:[#allocation13 + $0x68] sm:$0xff]  ;;  %s3853_s1 = smov 64   ;;  %s3854_s22 = smov 48   ;;  %vm2494_vm4 = vcmask 392192  }
  0x97   : > { %3033 = vmatprep.subr.mxu0 %v3848_v0  ;;  %3073 = vmatpush3.msra.mxu1 %v603_v9  ;;  %v493_v11 = vld [vmem:[#allocation12 + $0x38] sm:$0xff]  ;;  %v492_v13 = vld [vmem:[#allocation12 + $0x30] sm:$0xff]  ;;  %v600_v14 = vld [vmem:[#allocation13 + $0x60] sm:$0xff]  ;;  %s3855_s19 = smov 32   ;;  %s3856_s16 = smov 16   ;;  %vm2497_vm5 = vcmask 523264  }
  0x98   : > { %3034 = vmatpush3.msra.mxu0 %v500_v2  ;;  %3074 = vmatprep.subr.mxu1 %v3848_v0  ;;  %v491_v15 = vld [vmem:[#allocation12 + $0x28] sm:$0xff]  ;;  %v599_v16 = vld [vmem:[#allocation13 + $0x58] sm:$0xff]  ;;  %v490_v17 = vld [vmem:[#allocation12 + $0x20] sm:$0xff]  ;;  %vm2500_vm6 = vcmask 654336   ;;  %vm2503_vm7 = vcmask 785408   ;;  %vm2506_vm8 = vcmask 916480  }
  0x99   : > { %3035 = vmatprep.subr.mxu0 %v3848_v0  ;;  %3075 = vmatpush3.msra.mxu1 %v602_v10  ;;  %v598_v18 = vld [vmem:[#allocation13 + $0x50] sm:$0xff]  ;;  %v489_v19 = vld [vmem:[#allocation12 + $0x18] sm:$0xff]  ;;  %v597_v20 = vld [vmem:[#allocation13 + $0x48] sm:$0xff]  ;;  %s476_s12 = scalar_lea.vmem [#allocation16], %s2807_s3  ;;  %s2876_s6 = sshll.u32 %s3829_s30, 8 }
  0x9a   : > { %3036 = vmatpush3.msra.mxu0 %v499_v3  ;;  %3076 = vmatprep.subr.mxu1 %v3848_v0  ;;  %v488_v21 = vld [vmem:[#allocation12 + $0x10] sm:$0xff]  ;;  %v596_v22 = vld [vmem:[#allocation13 + $0x40] sm:$0xff]  ;;  %v487_v23 = vld [vmem:[#allocation12 + $0x8] sm:$0xff]  ;;  %s2625_s23 = sshll.u32 %s476_s12, 4  ;;  %s4506_s27 = scalar_lea.hbm %s4562_s8, %s2876_s6  ;;  %s4501_s23 = int_to_ptr.vmem [resolvable:$true] %s2625_s23 }
  0x9b   : > { %3037 = vmatprep.subr.mxu0 %v3848_v0  ;;  %3077 = vmatpush3.msra.mxu1 %v601_v12  ;;  %v595_v24 = vld [vmem:[#allocation13 + $0x38] sm:$0xff]  ;;  %v486_v25 = vld [vmem:[#allocation12] sm:$0xff]  ;;  %v594_v26 = vld [vmem:[#allocation13 + $0x30] sm:$0xff]  ;;  %s3745_s3 = scalar_lea.vmem %s4501_s23, 256  ;;  %s3857_s30 = smov [#allocation16]  }
  0x9c   : > { %3038 = vmatpush3.msra.mxu0 %v498_v4  ;;  %3078 = vmatprep.subr.mxu1 %v3848_v0  ;;  %v483_v27 = vld [vmem:[%s4113_s17] sm:$0xff]  ;;  %v703_v29 = vld [vmem:[#allocation10 + $0x70] sm:$0xff]  ;;  %v593_v30 = vld [vmem:[#allocation13 + $0x28] sm:$0xff]  ;;  %p3746_p4 = scmp.ne.s32.totalorder %s4501_s23, %s3745_s3  ;;  %s3749_s15 = sshll.u32 %s3857_s30, 4  ;;  %s3750_s15 = int_to_ptr.vmem [resolvable:$false] %s3749_s15 }
  0x9d   : > { %3039 = vmatprep.subr.mxu0 %v3848_v0  ;;  %3079 = vmatpush3.msra.mxu1 %v600_v14  ;;  %v704_v28 = vld [vmem:[#allocation10 + $0x78] sm:$0xff]  ;;  %v484_v31 = vld [vmem:[%s4113_s17 + $0x8] sm:$0xff]  ;;  %v485_v34 = vld [vmem:[%s4113_s17 + $0x10] sm:$0xff]  ;;  %s3751_s24 = scalar_lea.vmem %s3750_s15, 512  ;;  %p3752_p6 = scmp.lt.s32.totalorder %s4501_s23, %s3750_s15 }
  0x9e   : > { %3040 = vmatpush3.msra.mxu0 %v497_v5  ;;  %3080 = vmatprep.subr.mxu1 %v3848_v0  ;;  %v702_v32 = vld [vmem:[#allocation10 + $0x68] sm:$0xff]  ;;  %v701_v33 = vld [vmem:[#allocation10 + $0x60] sm:$0xff]  ;;  %v700_v35 = vld [vmem:[#allocation10 + $0x58] sm:$0xff]  ;;  %p3747_p2 = pnand %p3746_p4, %p4002_p7  ;;  %p3753_p11 = scmp.lt.s32.totalorder %s3751_s24, %s3745_s3 }
  0x9f   : > { %3041 = vmatprep.subr.mxu0 %v3848_v0  ;;  %3081 = vmatpush3.msra.mxu1 %v599_v16  ;;  %v687_v36 = vld [vmem:[%s4105_s25] sm:$0xff]  ;;  %v698_v38 = vld [vmem:[#allocation10 + $0x48] sm:$0xff]  ;;  %v696_v40 = vld [vmem:[#allocation10 + $0x38] sm:$0xff] }
  0xa0   : > { %3042 = vmatpush3.msra.mxu0 %v496_v6  ;;  %3082 = vmatprep.subr.mxu1 %v3848_v0  ;;  %v699_v37 = vld [vmem:[#allocation10 + $0x50] sm:$0xff]  ;;  %v697_v39 = vld [vmem:[#allocation10 + $0x40] sm:$0xff]  ;;  %v694_v42 = vld [vmem:[#allocation10 + $0x28] sm:$0xff]  ;;  %p3748_p3 = pneg %p3747_p2  ;;  %p3754_p9 = por %p3753_p11, %p3752_p6 }
  0xa1   : > { %3043 = vmatprep.subr.mxu0 %v3848_v0  ;;  %3083 = vmatpush3.msra.mxu1 %v598_v18  ;;  %v695_v41 = vld [vmem:[#allocation10 + $0x30] sm:$0xff]  ;;  %v693_v43 = vld [vmem:[#allocation10 + $0x20] sm:$0xff]  ;;  %v692_v44 = vld [vmem:[#allocation10 + $0x18] sm:$0xff] }
  0xa2   : > { %3044 = vmatpush3.msra.mxu0 %v495_v7  ;;  %3084 = vmatprep.subr.mxu1 %v3848_v0  ;;  %v691_v45 = vld [vmem:[#allocation10 + $0x10] sm:$0xff]  ;;  %v690_v46 = vld [vmem:[#allocation10 + $0x8] sm:$0xff]  ;;  %v689_v47 = vld [vmem:[#allocation10] sm:$0xff]  ;;  %p3755_p13 = pnand %p3754_p9, %p3748_p3 }
  0xa3   : > { %3045 = vmatprep.subr.mxu0 %v3848_v0  ;;  %3085 = vmatpush3.msra.mxu1 %v597_v20  ;;  %v688_v48 = vld [vmem:[%s4105_s25 + $0x8] sm:$0xff]  ;;  %v592_v49 = vld [vmem:[#allocation13 + $0x20] sm:$0xff]  ;;  %v590_v51 = vld [vmem:[#allocation13 + $0x10] sm:$0xff]  ;;  %s2610_s25 = scalar_lea.sflag [#allocation6], %s4099_s20 }
  0xa4   : > { %3046 = vmatpush3.msra.mxu0 %v494_v8  ;;  %3086 = vmatprep.subr.mxu1 %v3848_v0  ;;  %v591_v50 = vld [vmem:[#allocation13 + $0x18] sm:$0xff]  ;;  %v589_v52 = vld [vmem:[#allocation13 + $0x8] sm:$0xff]  ;;  %v588_v53 = vld [vmem:[#allocation13] sm:$0xff] }
  0xa5   : > { %3047 = vmatprep.subr.mxu0 %v3848_v0  ;;  %3087 = vmatpush3.msra.mxu1 %v596_v22  ;;  %v585_v54 = vld [vmem:[%s4119_s18] sm:$0xff]  ;;  %v586_v55 = vld [vmem:[%s4119_s18 + $0x8] sm:$0xff]  ;;  %v587_v56 = vld [vmem:[%s4119_s18 + $0x10] sm:$0xff] }
  0xa6   : > { %3048 = vmatpush3.msra.mxu0 %v493_v11  ;;  %3088 = vmatprep.subr.mxu1 %v3848_v0 }
  0xa7   : > { %3049 = vmatprep.subr.mxu0 %v3848_v0  ;;  %3089 = vmatpush3.msra.mxu1 %v595_v24 }
  0xa8   : > { %3050 = vmatpush3.msra.mxu0 %v492_v13  ;;  %3090 = vmatprep.subr.mxu1 %v3848_v0 }
  0xa9   : > { %3051 = vmatprep.subr.mxu0 %v3848_v0  ;;  %3091 = vmatpush3.msra.mxu1 %v594_v26 }
  0xaa   : > { %3052 = vmatpush3.msra.mxu0 %v491_v15  ;;  %3092 = vmatprep.subr.mxu1 %v3848_v0 }
  0xab   : > { %3053 = vmatprep.subr.mxu0 %v3848_v0  ;;  %3093 = vmatpush3.msra.mxu1 %v593_v30 }
  0xac   : > { %3054 = vmatpush3.msra.mxu0 %v490_v17  ;;  %3094 = vmatprep.subr.mxu1 %v3848_v0 }
  0xad   : > { %3055 = vmatprep.subr.mxu0 %v3848_v0  ;;  %3095 = vmatpush3.msra.mxu1 %v592_v49 }
  0xae   : > { %3056 = vmatpush3.msra.mxu0 %v489_v19  ;;  %3096 = vmatprep.subr.mxu1 %v3848_v0 }
  0xaf   : > { %3057 = vmatprep.subr.mxu0 %v3848_v0  ;;  %3097 = vmatpush3.msra.mxu1 %v591_v50 }
  0xb0   : > { %3058 = vmatpush3.msra.mxu0 %v488_v21  ;;  %3098 = vmatprep.subr.mxu1 %v3848_v0 }
  0xb1   : > { %3059 = vmatprep.subr.mxu0 %v3848_v0  ;;  %3099 = vmatpush3.msra.mxu1 %v590_v51 }
  0xb2   : > { %3060 = vmatpush3.msra.mxu0 %v487_v23  ;;  %3100 = vmatprep.subr.mxu1 %v3848_v0 }
  0xb3   : > { %3061 = vmatprep.subr.mxu0 %v3848_v0  ;;  %3101 = vmatpush3.msra.mxu1 %v589_v52 }
  0xb4   : > { %3062 = vmatpush3.msra.mxu0 %v486_v25  ;;  %3102 = vmatprep.subr.mxu1 %v3848_v0 }
  0xb5   : > { %3064 = vmatmul.mubr.f32.vlgmr.msra.gmra.mxu0 %v483_v27  ;;  %3113 = vmatprep.subr.mxu0 %v704_v28 }
  0xb6   : > { %3114 = vmatpush3.msra.mxu0 %v704_v28  ;;  %3066 = vmatprep.mubr.msk.f32.mxu0 %vm3849_vm0, %v3848_v0 }
  0xb7   : > { %3115 = vmatprep.subr.mxu0 %v703_v29  ;;  %3103 = vmatpush3.msra.mxu1 %v588_v53 }
  0xb8   : > { %3116 = vmatpush3.msra.mxu0 %v703_v29  ;;  %3105 = vmatmul.mubr.f32.vlgmr.msra.gmra.mxu1 %v585_v54 }
  0xb9   : > { %3067 = vmatmul.mubr.f32.gmra.mxu0 %v484_v31  ;;  %3117 = vmatprep.subr.mxu0 %v702_v32 }
  0xba   : > { %3118 = vmatpush3.msra.mxu0 %v702_v32  ;;  %3069 = vmatprep.mubr.msk.f32.mxu0 %vm3849_vm0, %v3848_v0 }
  0xbb   : > { %3119 = vmatprep.subr.mxu0 %v701_v33  ;;  %3107 = vmatprep.mubr.msk.f32.mxu1 %vm3849_vm0, %v3848_v0 }
  0xbc   : > { %3120 = vmatpush3.msra.mxu0 %v701_v33  ;;  %3108 = vmatmul.mubr.f32.gmra.mxu1 %v586_v55 }
  0xbd   : > { %3070 = vmatmul.mubr.f32.gmra.mxu0 %v485_v34  ;;  %3121 = vmatprep.subr.mxu0 %v700_v35 }
  0xbe   : > { %3122 = vmatpush3.msra.mxu0 %v700_v35  ;;  %3145 = vmatprep.mubr.f32.mxu0 %v687_v36 }
  0xbf   : > { %3123 = vmatprep.subr.mxu0 %v699_v37  ;;  %3110 = vmatprep.mubr.msk.f32.mxu1 %vm3849_vm0, %v3848_v0 }
  0xc0   : > { %3124 = vmatpush3.msra.mxu0 %v699_v37  ;;  %3111 = vmatmul.mubr.f32.gmra.mxu1 %v587_v56 }
  0xc1   : > { %3125 = vmatprep.subr.mxu0 %v698_v38 }
  0xc2   : > { %3126 = vmatpush3.msra.mxu0 %v698_v38 }
  0xc3   : > { %3127 = vmatprep.subr.mxu0 %v697_v39 }
  0xc4   : > { %3128 = vmatpush3.msra.mxu0 %v697_v39 }
  0xc5   : > { %3129 = vmatprep.subr.mxu0 %v696_v40 }
  0xc6   : > { %3130 = vmatpush3.msra.mxu0 %v696_v40 }
  0xc7   : > { %3131 = vmatprep.subr.mxu0 %v695_v41 }
  0xc8   : > { %3132 = vmatpush3.msra.mxu0 %v695_v41 }
  0xc9   : > { %3133 = vmatprep.subr.mxu0 %v694_v42 }
  0xca   : > { %3134 = vmatpush3.msra.mxu0 %v694_v42 }
  0xcb   : > { %3135 = vmatprep.subr.mxu0 %v693_v43 }
  0xcc   : > { %3136 = vmatpush3.msra.mxu0 %v693_v43 }
  0xcd   : > { %3137 = vmatprep.subr.mxu0 %v692_v44 }
  0xce   : > { %3138 = vmatpush3.msra.mxu0 %v692_v44 }
  0xcf   : > { %3139 = vmatprep.subr.mxu0 %v691_v45 }
  0xd0   : > { %3140 = vmatpush3.msra.mxu0 %v691_v45 }
  0xd1   : > { %3141 = vmatprep.subr.mxu0 %v690_v46 }
  0xd2   : > { %3142 = vmatpush3.msra.mxu0 %v690_v46 }
  0xd3   : > { %3143 = vmatprep.subr.mxu0 %v689_v47 }
  0xd4   : > { %3144 = vmatpush3.msra.mxu0 %v689_v47 }
  0xd5   : > { %3146 = vmatmul.mubr.f32.vlgmr.msra.gmra.mxu0 %v688_v48 }
 0x175   : > { %v4181_v57 = vpop.f32.mrf.mxu0 }
 0x177   : > { %v3065_v58 = vpop.f32.mrf.mxu0 }
 0x178   : > { %v4209_v1 = vpop.f32.mrf.mxu1 }
 0x179   : > { %v4183_v59 = vpop.f32.mrf.mxu0 }
 0x17a   : > { %987 = vrot.lane.b32.xlu1 %v4183_v59, %s3850_s11  ;;  %v3106_v2 = vpop.f32.mrf.mxu1 }
 0x17b   : > { %v3068_v60 = vpop.f32.mrf.mxu0 }
 0x17c   : > { %v4211_v3 = vpop.f32.mrf.mxu1 }
 0x17d   : > { %v4187_v61 = vpop.f32.mrf.mxu0 }
 0x17e   : > { %3148 = vmatprep.subr.msk.mxu1 %vm786_vm1, %v4187_v61  ;;  %v3109_v4 = vpop.f32.mrf.mxu1 }
 0x17f   : > { %3149 = vmatpush3.xpose.msk.msra.mxu1 %vm786_vm1, %v4187_v61  ;;  %v3071_v62 = vpop.f32.mrf.mxu0 }
 0x180   : > { %3150 = vmatprep.subr.msk.mxu1 %vm786_vm1, %v4183_v59  ;;  %v4213_v5 = vpop.f32.mrf.mxu1 }
 0x182   : > { %v3112_v6 = vpop.f32.mrf.mxu1 }
 0x183   : > { %3151 = vmatpush3.xpose.msk.msra.mxu1 %vm786_vm1, %v4183_v59 }
 0x184   : > { %3152 = vmatprep.subr.msk.mxu1 %vm786_vm1, %v4181_v57 }
 0x187   : > { %3153 = vmatpush3.xpose.msk.msra.mxu1 %vm786_vm1, %v4181_v57 }
 0x188   : > { %3157 = vmatprep.subr.mxu1 %v4213_v5 }
 0x195   : > { %v4201_v63 = vpop.f32.mrf.mxu0 }
 0x197   : > { %v4203_v0 = vpop.f32.mrf.mxu0 }
 0x198   : > { %3154 = vmatprep.mubr.msk.f32.mxu1 %vm786_vm1, %v4203_v0 }
 0x199   : > { %3155 = vmatmul.mubr.msk.f32.vlgmr.msra.gmra.mxu1 %vm786_vm1, %v4201_v63 }
 0x19a   : > { %3158 = vmatpush3.msra.mxu1 %v4213_v5 }
 0x19b   : > { %3159 = vmatprep.subr.mxu1 %v4211_v3 }
 0x19c   : > { %3160 = vmatpush3.msra.mxu1 %v4211_v3 }
 0x19d   : > { %3161 = vmatprep.subr.mxu1 %v4209_v1 }
 0x19e   : > { %3162 = vmatpush3.msra.mxu1 %v4209_v1 }
 0x1ec   : > { %v988_v22 = vpop.permute.xlu1 %987 }
 0x259   : > { %v3156_v7 = vpop.f32.mrf.mxu1 }
 0x25a   : > { %v881_v10 = vsel %vm877_vm2, %v3156_v7, -inf }
 0x25b   : > { %v868_v8 = vpop.f32.mrf.mxu1 }
 0x25c   : > { %v878_v9 = vsel %vm877_vm2, %v868_v8, -inf }
 0x25d   : > { %879 = vmax.xlane.f32.xlu0 %v878_v9 }
 0x261   : > { %882 = vmax.xlane.f32.xlu0 %v881_v10 }
 0x277   : > { %989 = vrot.lane.b32.xlu0 %v4187_v61, %s3850_s11 }
 0x27b   : > { %983 = vrot.lane.b32.xlu0 %v4201_v63, %s3850_s11 }
 0x2e6   : > { %v880_v11 = vpop.xlane.xlu0 %879 }
 0x2e7   : > { %v884_v12 = vsub.f32 %v868_v8, %v880_v11 }
 0x2e9   : > { %v886_v15 = vmul.f32 1.442695, %v884_v12 }
 0x2ea   : > { %v883_v13 = vpop.xlane.xlu0 %882 }
 0x2eb   : > { %v885_v14 = vsub.f32 %v3156_v7, %v883_v13 }
 0x2ed   : > { %v888_v16 = vmul.f32 1.442695, %v885_v14 }
 0x2ee   : > { %v990_v17 = vpop.permute.xlu0 %989 }
 0x2ef   : > { %3493 = vpow2.f32 %v888_v16  ;;  %3166 = vmatprep.subr.msk.mxu1 %vm786_vm1, %v990_v17 }
 0x2f0   : > { %3495 = vpow2.f32 %v886_v15 }
 0x2f2   : > { %v984_v31 = vpop.permute.xlu0 %983 }
 0x2fc   : > { %v3494_v18 = vpop.eup %3493 }
 0x2fd   : > { %v893_v19 = vsel %vm877_vm2, %v3494_v18, 0.0  ;;  %v3496_v20 = vpop.eup %3495 }
 0x2fe   : > { %894 = vadd.xlane.f32.xlu1 %v893_v19  ;;  %v890_v21 = vsel %vm877_vm2, %v3496_v20, 0.0 }
 0x302   : > { %891 = vadd.xlane.f32.xlu1 %v890_v21 }
 0x313   : > { %985 = vrot.lane.b32.xlu1 %v4181_v57, %s3850_s11 }
 0x317   : > { %981 = vrot.lane.b32.xlu1 %v4203_v0, %s3850_s11 }
 0x387   : > { %v895_v23 = vpop.xlane.xlu1 %894 }
 0x388   : > { %3497 = vrcp.f32 %v895_v23 }
 0x38b   : > { %v892_v24 = vpop.xlane.xlu1 %891 }
 0x38c   : > { %3499 = vrcp.f32 %v892_v24 }
 0x38f   : > { %v986_v25 = vpop.permute.xlu1 %985 }
 0x393   : > { %v982_v30 = vpop.permute.xlu1 %981 }
 0x395   : > { %v3498_v26 = vpop.eup %3497 }
 0x396   : > { %v899_v29 = vmul.f32 %v3498_v26, %v3494_v18 }
 0x399   : > { %v3500_v27 = vpop.eup %3499 }
 0x39a   : > { %v898_v28 = vmul.f32 %v3500_v27, %v3496_v20 }
 0x39c   : > { %3163 = vmatprep.mubr.msk.f32.mxu1 %vm877_vm2, %v898_v28 }
 0x39d   : > { %3164 = vmatmul.mubr.msk.f32.vlgmr.msra.gmra.mxu1 %vm877_vm2, %v899_v29 }
 0x39e   : > { %3167 = vmatpush3.xpose.msk.msra.mxu1 %vm786_vm1, %v990_v17  ;;  %3172 = vmatprep.mubr.msk.f32.mxu1 %vm786_vm1, %v982_v30 }
 0x39f   : > { %3168 = vmatprep.subr.msk.mxu1 %vm786_vm1, %v988_v22 }
 0x3a2   : > { %3169 = vmatpush3.xpose.msk.msra.mxu1 %vm786_vm1, %v988_v22 }
 0x3a3   : > { %3170 = vmatprep.subr.msk.mxu1 %vm786_vm1, %v986_v25 }
 0x3a6   : > { %3171 = vmatpush3.xpose.msk.msra.mxu1 %vm786_vm1, %v986_v25 }
 0x3a9   : > { %3173 = vmatmul.mubr.msk.f32.vlgmr.msra.gmra.mxu1 %vm786_vm1, %v984_v31 }
 0x45d   : > { %v4243_v32 = vpop.f32.mrf.mxu1 }
 0x45f   : > { %v4245_v33 = vpop.f32.mrf.mxu1 }
 0x469   : > { %v3174_v34 = vpop.f32.mrf.mxu1 }
 0x46a   : > { %v1079_v35 = vsel %vm877_vm2, %v3174_v34, -inf }
 0x46b   : > { %1080 = vmax.xlane.f32.xlu0 %v1079_v35  ;;  %v1067_v36 = vpop.f32.mrf.mxu1 }
 0x46c   : > { %v1076_v37 = vsel %vm877_vm2, %v1067_v36, -inf }
 0x46d   : > { %1077 = vmax.xlane.f32.xlu1 %v1076_v37 }
 0x47e   : > { %1105 = vrot.lane.b32.xlu1 %v4213_v5, %s3850_s11 }
 0x482   : > { %1101 = vrot.lane.b32.xlu1 %v4209_v1, %s3850_s11 }
 0x486   : > { %1199 = vrot.lane.b32.xlu1 %v4187_v61, %s3851_s13 }
 0x48a   : > { %1197 = vrot.lane.b32.xlu1 %v4183_v59, %s3851_s13 }
 0x48e   : > { %1191 = vrot.lane.b32.xlu1 %v4203_v0, %s3851_s13 }
 0x4f4   : > { %v1081_v38 = vpop.xlane.xlu0 %1080 }
 0x4f5   : > { %v1083_v39 = vsub.f32 %v3174_v34, %v1081_v38 }
 0x4f6   : > { %v1078_v40 = vpop.xlane.xlu1 %1077 }
 0x4f7   : > { %v1086_v41 = vmul.f32 1.442695, %v1083_v39  ;;  %v1082_v42 = vsub.f32 %v1067_v36, %v1078_v40 }
 0x4f9   : > { %3501 = vpow2.f32 %v1086_v41  ;;  %v1084_v43 = vmul.f32 1.442695, %v1082_v42 }
 0x4fa   : > { %v1106_v44 = vpop.permute.xlu1 %1105 }
 0x4fb   : > { %3503 = vpow2.f32 %v1084_v43  ;;  %3175 = vmatprep.subr.mxu1 %v1106_v44 }
 0x4fc   : > { %3176 = vmatpush3.msra.mxu1 %v1106_v44 }
 0x4fe   : > { %v1102_v50 = vpop.permute.xlu1 %1101 }
 0x502   : > { %v1200_v53 = vpop.permute.xlu1 %1199 }
 0x506   : > { %v3502_v45 = vpop.eup %3501  ;;  %v1198_v54 = vpop.permute.xlu1 %1197 }
 0x507   : > { %v1091_v46 = vsel %vm877_vm2, %v3502_v45, 0.0 }
 0x508   : > { %v3504_v47 = vpop.eup %3503  ;;  %1092 = vadd.xlane.f32.xlu0 %v1091_v46 }
 0x509   : > { %v1088_v48 = vsel %vm877_vm2, %v3504_v47, 0.0 }
 0x50a   : > { %v1192_v62 = vpop.permute.xlu1 %1191 }
 0x50c   : > { %1089 = vadd.xlane.f32.xlu0 %v1088_v48 }
 0x522   : > { %1103 = vrot.lane.b32.xlu0 %v4211_v3, %s3850_s11 }
 0x526   : > { %1195 = vrot.lane.b32.xlu0 %v4181_v57, %s3851_s13 }
 0x52a   : > { %1193 = vrot.lane.b32.xlu0 %v4201_v63, %s3851_s13 }
 0x591   : > { %v1093_v49 = vpop.xlane.xlu0 %1092 }
 0x592   : > { %3505 = vrcp.f32 %v1093_v49 }
 0x595   : > { %v1090_v51 = vpop.xlane.xlu0 %1089 }
 0x596   : > { %3507 = vrcp.f32 %v1090_v51 }
 0x599   : > { %v1104_v52 = vpop.permute.xlu0 %1103 }
 0x59a   : > { %3177 = vmatprep.subr.mxu1 %v1104_v52 }
 0x59b   : > { %3178 = vmatpush3.msra.mxu1 %v1104_v52 }
 0x59c   : > { %3179 = vmatprep.subr.mxu1 %v1102_v50 }
 0x59d   : > { %3180 = vmatpush3.msra.mxu1 %v1102_v50  ;;  %v1196_v2 = vpop.permute.xlu0 %1195 }
 0x59e   : > { %3184 = vmatprep.subr.msk.mxu1 %vm786_vm1, %v1200_v53 }
 0x59f   : > { %v3506_v55 = vpop.eup %3505 }
 0x5a0   : > { %v1097_v60 = vmul.f32 %v3506_v55, %v3502_v45 }
 0x5a1   : > { %v1194_v4 = vpop.permute.xlu0 %1193 }
 0x5a3   : > { %v3508_v56 = vpop.eup %3507 }
 0x5a4   : > { %v1096_v58 = vmul.f32 %v3508_v56, %v3504_v47 }
 0x5a6   : > { %3181 = vmatprep.mubr.msk.f32.mxu1 %vm877_vm2, %v1096_v58 }
 0x5a7   : > { %3182 = vmatmul.mubr.msk.f32.vlgmr.msra.gmra.mxu1 %vm877_vm2, %v1097_v60 }
 0x5a8   : > { %3185 = vmatpush3.xpose.msk.msra.mxu1 %vm786_vm1, %v1200_v53  ;;  %3190 = vmatprep.mubr.msk.f32.mxu1 %vm786_vm1, %v1192_v62 }
 0x5a9   : > { %3186 = vmatprep.subr.msk.mxu1 %vm786_vm1, %v1198_v54 }
 0x5ac   : > { %3187 = vmatpush3.xpose.msk.msra.mxu1 %vm786_vm1, %v1198_v54 }
 0x5ad   : > { %3188 = vmatprep.subr.msk.mxu1 %vm786_vm1, %v1196_v2 }
 0x5b0   : > { %3189 = vmatpush3.xpose.msk.msra.mxu1 %vm786_vm1, %v1196_v2 }
 0x5b3   : > { %3191 = vmatmul.mubr.msk.f32.vlgmr.msra.gmra.mxu1 %vm786_vm1, %v1194_v4 }
 0x667   : > { %v4277_v6 = vpop.f32.mrf.mxu1 }
 0x669   : > { %v4279_v7 = vpop.f32.mrf.mxu1 }
 0x66a   : > { %v3458_v8 = vpack.i.bf16 %v4277_v6, %v4279_v7 }
 0x673   : > { %v3192_v9 = vpop.f32.mrf.mxu1 }
 0x674   : > { %v1289_v10 = vsel %vm877_vm2, %v3192_v9, -inf }
 0x675   : > { %1290 = vmax.xlane.f32.xlu0 %v1289_v10  ;;  %v1277_v11 = vpop.f32.mrf.mxu1 }
 0x676   : > { %v1286_v12 = vsel %vm877_vm2, %v1277_v11, -inf }
 0x677   : > { %1287 = vmax.xlane.f32.xlu1 %v1286_v12 }
 0x688   : > { %1312 = vrot.lane.b32.xlu1 %v4213_v5, %s3851_s13 }
 0x68c   : > { %1308 = vrot.lane.b32.xlu1 %v4209_v1, %s3851_s13 }
 0x690   : > { %1406 = vrot.lane.b32.xlu1 %v4187_v61, %s3852_s14 }
 0x694   : > { %1404 = vrot.lane.b32.xlu1 %v4183_v59, %s3852_s14 }
 0x698   : > { %1398 = vrot.lane.b32.xlu1 %v4203_v0, %s3852_s14 }
 0x6fe   : > { %v1291_v13 = vpop.xlane.xlu0 %1290 }
 0x6ff   : > { %v1293_v14 = vsub.f32 %v3192_v9, %v1291_v13 }
 0x700   : > { %v1288_v15 = vpop.xlane.xlu1 %1287 }
 0x701   : > { %v1296_v16 = vmul.f32 1.442695, %v1293_v14  ;;  %v1292_v17 = vsub.f32 %v1277_v11, %v1288_v15 }
 0x703   : > { %3509 = vpow2.f32 %v1296_v16  ;;  %v1294_v18 = vmul.f32 1.442695, %v1292_v17 }
 0x704   : > { %v1313_v19 = vpop.permute.xlu1 %1312 }
 0x705   : > { %3511 = vpow2.f32 %v1294_v18  ;;  %3193 = vmatprep.subr.mxu1 %v1313_v19 }
 0x706   : > { %3194 = vmatpush3.msra.mxu1 %v1313_v19 }
 0x708   : > { %v1309_v25 = vpop.permute.xlu1 %1308 }
 0x70c   : > { %v1407_v28 = vpop.permute.xlu1 %1406 }
 0x710   : > { %v3510_v20 = vpop.eup %3509  ;;  %v1405_v29 = vpop.permute.xlu1 %1404 }
 0x711   : > { %v1301_v21 = vsel %vm877_vm2, %v3510_v20, 0.0 }
 0x712   : > { %v3512_v22 = vpop.eup %3511  ;;  %1302 = vadd.xlane.f32.xlu0 %v1301_v21 }
 0x713   : > { %v1298_v23 = vsel %vm877_vm2, %v3512_v22, 0.0 }
 0x714   : > { %v1399_v36 = vpop.permute.xlu1 %1398 }
 0x716   : > { %1299 = vadd.xlane.f32.xlu0 %v1298_v23 }
 0x72c   : > { %1310 = vrot.lane.b32.xlu0 %v4211_v3, %s3851_s13 }
 0x730   : > { %1402 = vrot.lane.b32.xlu0 %v4181_v57, %s3852_s14 }
 0x734   : > { %1400 = vrot.lane.b32.xlu0 %v4201_v63, %s3852_s14 }
 0x79b   : > { %v1303_v24 = vpop.xlane.xlu0 %1302 }
 0x79c   : > { %3513 = vrcp.f32 %v1303_v24 }
 0x79f   : > { %v1300_v26 = vpop.xlane.xlu0 %1299 }
 0x7a0   : > { %3515 = vrcp.f32 %v1300_v26 }
 0x7a3   : > { %v1311_v27 = vpop.permute.xlu0 %1310 }
 0x7a4   : > { %3195 = vmatprep.subr.mxu1 %v1311_v27 }
 0x7a5   : > { %3196 = vmatpush3.msra.mxu1 %v1311_v27 }
 0x7a6   : > { %3197 = vmatprep.subr.mxu1 %v1309_v25 }
 0x7a7   : > { %3198 = vmatpush3.msra.mxu1 %v1309_v25  ;;  %v1403_v37 = vpop.permute.xlu0 %1402 }
 0x7a8   : > { %3202 = vmatprep.subr.msk.mxu1 %vm786_vm1, %v1407_v28 }
 0x7a9   : > { %v3514_v30 = vpop.eup %3513 }
 0x7aa   : > { %v1307_v35 = vmul.f32 %v3514_v30, %v3510_v20 }
 0x7ab   : > { %v1401_v38 = vpop.permute.xlu0 %1400 }
 0x7ad   : > { %v3516_v31 = vpop.eup %3515 }
 0x7ae   : > { %v1306_v34 = vmul.f32 %v3516_v31, %v3512_v22 }
 0x7b0   : > { %3199 = vmatprep.mubr.msk.f32.mxu1 %vm877_vm2, %v1306_v34 }
 0x7b1   : > { %3200 = vmatmul.mubr.msk.f32.vlgmr.msra.gmra.mxu1 %vm877_vm2, %v1307_v35 }
 0x7b2   : > { %3203 = vmatpush3.xpose.msk.msra.mxu1 %vm786_vm1, %v1407_v28  ;;  %3208 = vmatprep.mubr.msk.f32.mxu1 %vm786_vm1, %v1399_v36 }
 0x7b3   : > { %3204 = vmatprep.subr.msk.mxu1 %vm786_vm1, %v1405_v29 }
 0x7b6   : > { %3205 = vmatpush3.xpose.msk.msra.mxu1 %vm786_vm1, %v1405_v29 }
 0x7b7   : > { %3206 = vmatprep.subr.msk.mxu1 %vm786_vm1, %v1403_v37 }
 0x7ba   : > { %3207 = vmatpush3.xpose.msk.msra.mxu1 %vm786_vm1, %v1403_v37 }
 0x7bd   : > { %3209 = vmatmul.mubr.msk.f32.vlgmr.msra.gmra.mxu1 %vm786_vm1, %v1401_v38 }
 0x871   : > { %v4313_v39 = vpop.f32.mrf.mxu1 }
 0x873   : > { %v4315_v40 = vpop.f32.mrf.mxu1 }
 0x874   : > { %v3463_v41 = vpack.i.bf16 %v4313_v39, %v4315_v40 }
 0x87d   : > { %v3210_v42 = vpop.f32.mrf.mxu1 }
 0x87e   : > { %v1496_v43 = vsel %vm877_vm2, %v3210_v42, -inf }
 0x87f   : > { %1497 = vmax.xlane.f32.xlu0 %v1496_v43  ;;  %v1484_v44 = vpop.f32.mrf.mxu1 }
 0x880   : > { %v1493_v45 = vsel %vm877_vm2, %v1484_v44, -inf }
 0x881   : > { %1494 = vmax.xlane.f32.xlu1 %v1493_v45 }
 0x892   : > { %1519 = vrot.lane.b32.xlu1 %v4213_v5, %s3852_s14 }
 0x896   : > { %1515 = vrot.lane.b32.xlu1 %v4209_v1, %s3852_s14 }
 0x89a   : > { %1613 = vrot.lane.b32.xlu1 %v4187_v61, %s3853_s1 }
 0x89e   : > { %1611 = vrot.lane.b32.xlu1 %v4183_v59, %s3853_s1 }
 0x8a2   : > { %1605 = vrot.lane.b32.xlu1 %v4203_v0, %s3853_s1 }
 0x908   : > { %v1498_v46 = vpop.xlane.xlu0 %1497 }
 0x909   : > { %v1500_v47 = vsub.f32 %v3210_v42, %v1498_v46 }
 0x90a   : > { %v1495_v48 = vpop.xlane.xlu1 %1494 }
 0x90b   : > { %v1503_v49 = vmul.f32 1.442695, %v1500_v47  ;;  %v1499_v50 = vsub.f32 %v1484_v44, %v1495_v48 }
 0x90d   : > { %3517 = vpow2.f32 %v1503_v49  ;;  %v1501_v51 = vmul.f32 1.442695, %v1499_v50 }
 0x90e   : > { %v1520_v52 = vpop.permute.xlu1 %1519 }
 0x90f   : > { %3519 = vpow2.f32 %v1501_v51  ;;  %3211 = vmatprep.subr.mxu0 %v1520_v52 }
 0x910   : > { %3212 = vmatpush3.msra.mxu0 %v1520_v52 }
 0x912   : > { %v1516_v60 = vpop.permute.xlu1 %1515 }
 0x916   : > { %v1614_v4 = vpop.permute.xlu1 %1613 }
 0x91a   : > { %v3518_v53 = vpop.eup %3517  ;;  %v1612_v9 = vpop.permute.xlu1 %1611 }
 0x91b   : > { %v1508_v54 = vsel %vm877_vm2, %v3518_v53, 0.0 }
 0x91c   : > { %v3520_v55 = vpop.eup %3519  ;;  %1509 = vadd.xlane.f32.xlu0 %v1508_v54 }
 0x91d   : > { %v1505_v56 = vsel %vm877_vm2, %v3520_v55, 0.0 }
 0x91e   : > { %v1606_v14 = vpop.permute.xlu1 %1605 }
 0x920   : > { %1506 = vadd.xlane.f32.xlu0 %v1505_v56 }
 0x936   : > { %1517 = vrot.lane.b32.xlu0 %v4211_v3, %s3852_s14 }
 0x93a   : > { %1609 = vrot.lane.b32.xlu0 %v4181_v57, %s3853_s1 }
 0x93e   : > { %1607 = vrot.lane.b32.xlu0 %v4201_v63, %s3853_s1 }
 0x9a5   : > { %v1510_v58 = vpop.xlane.xlu0 %1509 }
 0x9a6   : > { %3521 = vrcp.f32 %v1510_v58 }
 0x9a9   : > { %v1507_v62 = vpop.xlane.xlu0 %1506 }
 0x9aa   : > { %3523 = vrcp.f32 %v1507_v62 }
 0x9ad   : > { %v1518_v2 = vpop.permute.xlu0 %1517 }
 0x9ae   : > { %3213 = vmatprep.subr.mxu0 %v1518_v2 }
 0x9af   : > { %3214 = vmatpush3.msra.mxu0 %v1518_v2 }
 0x9b0   : > { %3215 = vmatprep.subr.mxu0 %v1516_v60 }
 0x9b1   : > { %3216 = vmatpush3.msra.mxu0 %v1516_v60  ;;  %v1610_v15 = vpop.permute.xlu0 %1609 }
 0x9b2   : > { %3220 = vmatprep.subr.msk.mxu0 %vm786_vm1, %v1614_v4 }
 0x9b3   : > { %v3522_v10 = vpop.eup %3521 }
 0x9b4   : > { %v1514_v13 = vmul.f32 %v3522_v10, %v3518_v53 }
 0x9b5   : > { %v1608_v16 = vpop.permute.xlu0 %1607 }
 0x9b7   : > { %v3524_v11 = vpop.eup %3523 }
 0x9b8   : > { %v1513_v12 = vmul.f32 %v3524_v11, %v3520_v55 }
 0x9ba   : > { %3217 = vmatprep.mubr.msk.f32.mxu0 %vm877_vm2, %v1513_v12 }
 0x9bb   : > { %3218 = vmatmul.mubr.msk.f32.vlgmr.msra.gmra.mxu0 %vm877_vm2, %v1514_v13 }
 0x9bc   : > { %3221 = vmatpush3.xpose.msk.msra.mxu0 %vm786_vm1, %v1614_v4  ;;  %3226 = vmatprep.mubr.msk.f32.mxu0 %vm786_vm1, %v1606_v14 }
 0x9bd   : > { %3222 = vmatprep.subr.msk.mxu0 %vm786_vm1, %v1612_v9 }
 0x9c0   : > { %3223 = vmatpush3.xpose.msk.msra.mxu0 %vm786_vm1, %v1612_v9 }
 0x9c1   : > { %3224 = vmatprep.subr.msk.mxu0 %vm786_vm1, %v1610_v15 }
 0x9c4   : > { %3225 = vmatpush3.xpose.msk.msra.mxu0 %vm786_vm1, %v1610_v15 }
 0x9c7   : > { %3227 = vmatmul.mubr.msk.f32.vlgmr.msra.gmra.mxu0 %vm786_vm1, %v1608_v16 }
 0xa7b   : > { %v4349_v17 = vpop.f32.mrf.mxu0 }
 0xa7d   : > { %v4351_v18 = vpop.f32.mrf.mxu0 }
 0xa7e   : > { %v3468_v19 = vpack.i.bf16 %v4349_v17, %v4351_v18  ;;  %v2524_v18 = vld [vmem:[#allocation15 + $0x78] sm:$0xff] }
 0xa87   : > { %v3228_v20 = vpop.f32.mrf.mxu0 }
 0xa88   : > { %v1703_v21 = vsel %vm877_vm2, %v3228_v20, -inf }
 0xa89   : > { %1704 = vmax.xlane.f32.xlu0 %v1703_v21  ;;  %v1691_v22 = vpop.f32.mrf.mxu0 }
 0xa8a   : > { %v1700_v23 = vsel %vm877_vm2, %v1691_v22, -inf }
 0xa8b   : > { %1701 = vmax.xlane.f32.xlu1 %v1700_v23 }
 0xa9c   : > { %1726 = vrot.lane.b32.xlu1 %v4213_v5, %s3853_s1 }
 0xaa0   : > { %1722 = vrot.lane.b32.xlu1 %v4209_v1, %s3853_s1 }
 0xaa4   : > { %1820 = vrot.lane.b32.xlu1 %v4187_v61, %s3854_s22 }
 0xaa8   : > { %1818 = vrot.lane.b32.xlu1 %v4183_v59, %s3854_s22 }
 0xaac   : > { %1812 = vrot.lane.b32.xlu1 %v4203_v0, %s3854_s22 }
 0xb12   : > { %v1705_v24 = vpop.xlane.xlu0 %1704 }
 0xb13   : > { %v1707_v25 = vsub.f32 %v3228_v20, %v1705_v24 }
 0xb14   : > { %v1702_v26 = vpop.xlane.xlu1 %1701 }
 0xb15   : > { %v1710_v27 = vmul.f32 1.442695, %v1707_v25  ;;  %v1706_v28 = vsub.f32 %v1691_v22, %v1702_v26 }
 0xb17   : > { %3525 = vpow2.f32 %v1710_v27  ;;  %v1708_v29 = vmul.f32 1.442695, %v1706_v28 }
 0xb18   : > { %v1727_v30 = vpop.permute.xlu1 %1726 }
 0xb19   : > { %3527 = vpow2.f32 %v1708_v29  ;;  %3229 = vmatprep.subr.mxu1 %v1727_v30 }
 0xb1a   : > { %3230 = vmatpush3.msra.mxu1 %v1727_v30 }
 0xb1c   : > { %v1723_v38 = vpop.permute.xlu1 %1722 }
 0xb20   : > { %v1821_v44 = vpop.permute.xlu1 %1820 }
 0xb24   : > { %v3526_v31 = vpop.eup %3525  ;;  %v1819_v45 = vpop.permute.xlu1 %1818 }
 0xb25   : > { %v1715_v34 = vsel %vm877_vm2, %v3526_v31, 0.0 }
 0xb26   : > { %v3528_v35 = vpop.eup %3527  ;;  %1716 = vadd.xlane.f32.xlu0 %v1715_v34 }
 0xb27   : > { %v1712_v36 = vsel %vm877_vm2, %v3528_v35, 0.0 }
 0xb28   : > { %v1813_v50 = vpop.permute.xlu1 %1812 }
 0xb2a   : > { %1713 = vadd.xlane.f32.xlu0 %v1712_v36 }
 0xb40   : > { %1724 = vrot.lane.b32.xlu0 %v4211_v3, %s3853_s1 }
 0xb44   : > { %1816 = vrot.lane.b32.xlu0 %v4181_v57, %s3854_s22 }
 0xb48   : > { %1814 = vrot.lane.b32.xlu0 %v4201_v63, %s3854_s22 }
 0xbaf   : > { %v1717_v37 = vpop.xlane.xlu0 %1716 }
 0xbb0   : > { %3529 = vrcp.f32 %v1717_v37 }
 0xbb3   : > { %v1714_v42 = vpop.xlane.xlu0 %1713 }
 0xbb4   : > { %3531 = vrcp.f32 %v1714_v42 }
 0xbb7   : > { %v1725_v43 = vpop.permute.xlu0 %1724 }
 0xbb8   : > { %3231 = vmatprep.subr.mxu1 %v1725_v43 }
 0xbb9   : > { %3232 = vmatpush3.msra.mxu1 %v1725_v43 }
 0xbba   : > { %3233 = vmatprep.subr.mxu1 %v1723_v38 }
 0xbbb   : > { %3234 = vmatpush3.msra.mxu1 %v1723_v38  ;;  %v1817_v51 = vpop.permute.xlu0 %1816 }
 0xbbc   : > { %3238 = vmatprep.subr.msk.mxu1 %vm786_vm1, %v1821_v44 }
 0xbbd   : > { %v3530_v46 = vpop.eup %3529 }
 0xbbe   : > { %v1721_v49 = vmul.f32 %v3530_v46, %v3526_v31 }
 0xbbf   : > { %v1815_v52 = vpop.permute.xlu0 %1814 }
 0xbc1   : > { %v3532_v47 = vpop.eup %3531 }
 0xbc2   : > { %v1720_v48 = vmul.f32 %v3532_v47, %v3528_v35 }
 0xbc4   : > { %3235 = vmatprep.mubr.msk.f32.mxu1 %vm877_vm2, %v1720_v48 }
 0xbc5   : > { %3236 = vmatmul.mubr.msk.f32.vlgmr.msra.gmra.mxu1 %vm877_vm2, %v1721_v49 }
 0xbc6   : > { %3239 = vmatpush3.xpose.msk.msra.mxu1 %vm786_vm1, %v1821_v44  ;;  %3244 = vmatprep.mubr.msk.f32.mxu1 %vm786_vm1, %v1813_v50 }
 0xbc7   : > { %3240 = vmatprep.subr.msk.mxu1 %vm786_vm1, %v1819_v45 }
 0xbca   : > { %3241 = vmatpush3.xpose.msk.msra.mxu1 %vm786_vm1, %v1819_v45 }
 0xbcb   : > { %3242 = vmatprep.subr.msk.mxu1 %vm786_vm1, %v1817_v51 }
 0xbce   : > { %3243 = vmatpush3.xpose.msk.msra.mxu1 %vm786_vm1, %v1817_v51 }
 0xbd1   : > { %3245 = vmatmul.mubr.msk.f32.vlgmr.msra.gmra.mxu1 %vm786_vm1, %v1815_v52 }
 0xc85   : > { %v4385_v53 = vpop.f32.mrf.mxu1 }
 0xc87   : > { %v4387_v54 = vpop.f32.mrf.mxu1 }
 0xc88   : > { %v3473_v55 = vpack.i.bf16 %v4385_v53, %v4387_v54 }
 0xc91   : > { %v3246_v56 = vpop.f32.mrf.mxu1 }
 0xc92   : > { %v1910_v58 = vsel %vm877_vm2, %v3246_v56, -inf }
 0xc93   : > { %1911 = vmax.xlane.f32.xlu0 %v1910_v58  ;;  %v1898_v60 = vpop.f32.mrf.mxu1 }
 0xc94   : > { %v1907_v62 = vsel %vm877_vm2, %v1898_v60, -inf }
 0xc95   : > { %1908 = vmax.xlane.f32.xlu1 %v1907_v62 }
 0xca6   : > { %1933 = vrot.lane.b32.xlu1 %v4213_v5, %s3854_s22 }
 0xcaa   : > { %1929 = vrot.lane.b32.xlu1 %v4209_v1, %s3854_s22 }
 0xcae   : > { %2027 = vrot.lane.b32.xlu1 %v4187_v61, %s3855_s19 }
 0xcb2   : > { %2025 = vrot.lane.b32.xlu1 %v4183_v59, %s3855_s19 }
 0xcb6   : > { %2019 = vrot.lane.b32.xlu1 %v4203_v0, %s3855_s19 }
 0xd1c   : > { %v1912_v2 = vpop.xlane.xlu0 %1911 }
 0xd1d   : > { %v1914_v4 = vsub.f32 %v3246_v56, %v1912_v2 }
 0xd1e   : > { %v1909_v9 = vpop.xlane.xlu1 %1908 }
 0xd1f   : > { %v1917_v10 = vmul.f32 1.442695, %v1914_v4  ;;  %v1913_v11 = vsub.f32 %v1898_v60, %v1909_v9 }
 0xd21   : > { %3533 = vpow2.f32 %v1917_v10  ;;  %v1915_v12 = vmul.f32 1.442695, %v1913_v11 }
 0xd22   : > { %v1934_v13 = vpop.permute.xlu1 %1933 }
 0xd23   : > { %3535 = vpow2.f32 %v1915_v12  ;;  %3247 = vmatprep.subr.mxu0 %v1934_v13 }
 0xd24   : > { %3248 = vmatpush3.msra.mxu0 %v1934_v13 }
 0xd26   : > { %v1930_v22 = vpop.permute.xlu1 %1929 }
 0xd2a   : > { %v2028_v25 = vpop.permute.xlu1 %2027 }
 0xd2e   : > { %v3534_v14 = vpop.eup %3533  ;;  %v2026_v26 = vpop.permute.xlu1 %2025 }
 0xd2f   : > { %v1922_v15 = vsel %vm877_vm2, %v3534_v14, 0.0 }
 0xd30   : > { %v3536_v16 = vpop.eup %3535  ;;  %1923 = vadd.xlane.f32.xlu0 %v1922_v15 }
 0xd31   : > { %v1919_v20 = vsel %vm877_vm2, %v3536_v16, 0.0 }
 0xd32   : > { %v2020_v31 = vpop.permute.xlu1 %2019 }
 0xd34   : > { %1920 = vadd.xlane.f32.xlu0 %v1919_v20 }
 0xd4a   : > { %1931 = vrot.lane.b32.xlu0 %v4211_v3, %s3854_s22 }
 0xd4e   : > { %2023 = vrot.lane.b32.xlu0 %v4181_v57, %s3855_s19 }
 0xd52   : > { %2021 = vrot.lane.b32.xlu0 %v4201_v63, %s3855_s19 }
 0xdb9   : > { %v1924_v21 = vpop.xlane.xlu0 %1923 }
 0xdba   : > { %3537 = vrcp.f32 %v1924_v21 }
 0xdbd   : > { %v1921_v23 = vpop.xlane.xlu0 %1920 }
 0xdbe   : > { %3539 = vrcp.f32 %v1921_v23 }
 0xdc1   : > { %v1932_v24 = vpop.permute.xlu0 %1931 }
 0xdc2   : > { %3249 = vmatprep.subr.mxu0 %v1932_v24 }
 0xdc3   : > { %3250 = vmatpush3.msra.mxu0 %v1932_v24 }
 0xdc4   : > { %3251 = vmatprep.subr.mxu0 %v1930_v22 }
 0xdc5   : > { %3252 = vmatpush3.msra.mxu0 %v1930_v22  ;;  %v2024_v34 = vpop.permute.xlu0 %2023 }
 0xdc6   : > { %3256 = vmatprep.subr.msk.mxu0 %vm786_vm1, %v2028_v25 }
 0xdc7   : > { %v3538_v27 = vpop.eup %3537 }
 0xdc8   : > { %v1928_v30 = vmul.f32 %v3538_v27, %v3534_v14 }
 0xdc9   : > { %v2022_v35 = vpop.permute.xlu0 %2021 }
 0xdcb   : > { %v3540_v28 = vpop.eup %3539 }
 0xdcc   : > { %v1927_v29 = vmul.f32 %v3540_v28, %v3536_v16 }
 0xdce   : > { %3253 = vmatprep.mubr.msk.f32.mxu0 %vm877_vm2, %v1927_v29 }
 0xdcf   : > { %3254 = vmatmul.mubr.msk.f32.vlgmr.msra.gmra.mxu0 %vm877_vm2, %v1928_v30 }
 0xdd0   : > { %3257 = vmatpush3.xpose.msk.msra.mxu0 %vm786_vm1, %v2028_v25  ;;  %3262 = vmatprep.mubr.msk.f32.mxu0 %vm786_vm1, %v2020_v31  ;;  %v2522_v31 = vld [vmem:[#allocation15 + $0x68] sm:$0xff] }
 0xdd1   : > { %3258 = vmatprep.subr.msk.mxu0 %vm786_vm1, %v2026_v26 }
 0xdd4   : > { %3259 = vmatpush3.xpose.msk.msra.mxu0 %vm786_vm1, %v2026_v26 }
 0xdd5   : > { %3260 = vmatprep.subr.msk.mxu0 %vm786_vm1, %v2024_v34 }
 0xdd8   : > { %3261 = vmatpush3.xpose.msk.msra.mxu0 %vm786_vm1, %v2024_v34  ;;  %v2521_v34 = vld [vmem:[#allocation15 + $0x60] sm:$0xff] }
 0xddb   : > { %3263 = vmatmul.mubr.msk.f32.vlgmr.msra.gmra.mxu0 %vm786_vm1, %v2022_v35  ;;  %v2520_v35 = vld [vmem:[#allocation15 + $0x58] sm:$0xff] }
 0xe8f   : > { %v4421_v36 = vpop.f32.mrf.mxu0 }
 0xe91   : > { %v4423_v37 = vpop.f32.mrf.mxu0 }
 0xe92   : > { %v3478_v38 = vpack.i.bf16 %v4421_v36, %v4423_v37  ;;  %v2519_v36 = vld [vmem:[#allocation15 + $0x50] sm:$0xff]  ;;  %v2518_v37 = vld [vmem:[#allocation15 + $0x48] sm:$0xff] }
 0xe9b   : > { %v3264_v42 = vpop.f32.mrf.mxu0 }
 0xe9c   : > { %v2117_v43 = vsel %vm877_vm2, %v3264_v42, -inf }
 0xe9d   : > { %2118 = vmax.xlane.f32.xlu0 %v2117_v43  ;;  %v2105_v44 = vpop.f32.mrf.mxu0  ;;  %v2515_v43 = vld [vmem:[#allocation15 + $0x30] sm:$0xff] }
 0xe9e   : > { %v2114_v45 = vsel %vm877_vm2, %v2105_v44, -inf }
 0xe9f   : > { %2115 = vmax.xlane.f32.xlu1 %v2114_v45  ;;  %v2513_v45 = vld [vmem:[#allocation15 + $0x20] sm:$0xff] }
 0xeb0   : > { %2140 = vrot.lane.b32.xlu1 %v4213_v5, %s3855_s19 }
 0xeb4   : > { %2136 = vrot.lane.b32.xlu1 %v4209_v1, %s3855_s19 }
 0xeb8   : > { %2234 = vrot.lane.b32.xlu1 %v4187_v61, %s3856_s16 }
 0xebc   : > { %2232 = vrot.lane.b32.xlu1 %v4183_v59, %s3856_s16 }
 0xec0   : > { %2226 = vrot.lane.b32.xlu1 %v4203_v0, %s3856_s16 }
 0xf26   : > { %v2119_v46 = vpop.xlane.xlu0 %2118 }
 0xf27   : > { %v2121_v47 = vsub.f32 %v3264_v42, %v2119_v46  ;;  %v2516_v42 = vld [vmem:[#allocation15 + $0x38] sm:$0xff] }
 0xf28   : > { %v2116_v48 = vpop.xlane.xlu1 %2115  ;;  %v2512_v46 = vld [vmem:[#allocation15 + $0x18] sm:$0xff] }
 0xf29   : > { %v2124_v49 = vmul.f32 1.442695, %v2121_v47  ;;  %v2120_v50 = vsub.f32 %v2105_v44, %v2116_v48  ;;  %v2514_v44 = vld [vmem:[#allocation15 + $0x28] sm:$0xff]  ;;  %v2511_v47 = vld [vmem:[#allocation15 + $0x10] sm:$0xff] }
 0xf2a   : > { %v2510_v48 = vld [vmem:[#allocation15 + $0x8] sm:$0xff] }
 0xf2b   : > { %3541 = vpow2.f32 %v2124_v49  ;;  %v2122_v51 = vmul.f32 1.442695, %v2120_v50  ;;  %v2509_v49 = vld [vmem:[#allocation15] sm:$0xff] }
 0xf2c   : > { %v2141_v52 = vpop.permute.xlu1 %2140 }
 0xf2d   : > { %3543 = vpow2.f32 %v2122_v51  ;;  %3265 = vmatprep.subr.mxu1 %v2141_v52 }
 0xf2e   : > { %3266 = vmatpush3.msra.mxu1 %v2141_v52 }
 0xf30   : > { %v2137_v60 = vpop.permute.xlu1 %2136 }
 0xf34   : > { %v2235_v4 = vpop.permute.xlu1 %2234 }
 0xf38   : > { %v3542_v56 = vpop.eup %3541  ;;  %v2233_v9 = vpop.permute.xlu1 %2232 }
 0xf39   : > { %v2129_v61 = vsel %vm877_vm2, %v3542_v56, 0.0 }
 0xf3a   : > { %v3544_v58 = vpop.eup %3543  ;;  %2130 = vadd.xlane.f32.xlu0 %v2129_v61 }
 0xf3b   : > { %v2126_v59 = vsel %vm877_vm2, %v3544_v58, 0.0 }
 0xf3e   : > { %2127 = vadd.xlane.f32.xlu0 %v2126_v59 }
 0xf54   : > { %2138 = vrot.lane.b32.xlu0 %v4211_v3, %s3855_s19 }
 0xf58   : > { %2230 = vrot.lane.b32.xlu0 %v4181_v57, %s3856_s16 }
 0xf5c   : > { %2228 = vrot.lane.b32.xlu0 %v4201_v63, %s3856_s16  ;;  %v2227_v63 = vpop.permute.xlu1 %2226 }
 0xfc3   : > { %v2131_v0 = vpop.xlane.xlu0 %2130 }
 0xfc4   : > { %3545 = vrcp.f32 %v2131_v0 }
 0xfc7   : > { %v2128_v62 = vpop.xlane.xlu0 %2127 }
 0xfc8   : > { %3547 = vrcp.f32 %v2128_v62 }
 0xfcb   : > { %v2139_v2 = vpop.permute.xlu0 %2138 }
 0xfcc   : > { %3267 = vmatprep.subr.mxu1 %v2139_v2 }
 0xfcd   : > { %3268 = vmatpush3.msra.mxu1 %v2139_v2 }
 0xfce   : > { %3269 = vmatprep.subr.mxu1 %v2137_v60 }
 0xfcf   : > { %3270 = vmatpush3.msra.mxu1 %v2137_v60  ;;  %v2231_v13 = vpop.permute.xlu0 %2230 }
 0xfd0   : > { %3274 = vmatprep.subr.msk.mxu1 %vm786_vm1, %v2235_v4 }
 0xfd1   : > { %v3546_v10 = vpop.eup %3545 }
 0xfd2   : > { %v2135_v12 = vmul.f32 %v3546_v10, %v3542_v56 }
 0xfd3   : > { %v2229_v14 = vpop.permute.xlu0 %2228 }
 0xfd5   : > { %v3548_v11 = vpop.eup %3547 }
 0xfd6   : > { %v2134_v57 = vmul.f32 %v3548_v11, %v3544_v58 }
 0xfd8   : > { %3271 = vmatprep.mubr.msk.f32.mxu1 %vm877_vm2, %v2134_v57 }
 0xfd9   : > { %3272 = vmatmul.mubr.msk.f32.vlgmr.msra.gmra.mxu1 %vm877_vm2, %v2135_v12 }
 0xfda   : > { %3275 = vmatpush3.xpose.msk.msra.mxu1 %vm786_vm1, %v2235_v4  ;;  %3280 = vmatprep.mubr.msk.f32.mxu1 %vm786_vm1, %v2227_v63 }
 0xfdb   : > { %3276 = vmatprep.subr.msk.mxu1 %vm786_vm1, %v2233_v9 }
 0xfde   : > { %3277 = vmatpush3.xpose.msk.msra.mxu1 %vm786_vm1, %v2233_v9 }
 0xfdf   : > { %3278 = vmatprep.subr.msk.mxu1 %vm786_vm1, %v2231_v13 }
 0xfe2   : > { %3279 = vmatpush3.xpose.msk.msra.mxu1 %vm786_vm1, %v2231_v13 }
 0xfe5   : > { %3281 = vmatmul.mubr.msk.f32.vlgmr.msra.gmra.mxu1 %vm786_vm1, %v2229_v14 }
0x1099   : > { %v3273_v15 = vpop.f32.mrf.mxu1 }
0x109b   : > { %v2217_v16 = vpop.f32.mrf.mxu1 }
0x109c   : > { %v3483_v24 = vpack.i.bf16 %v3273_v15, %v2217_v16 }
0x10a5   : > { %v3282_v20 = vpop.f32.mrf.mxu1 }
0x10a6   : > { %v2324_v21 = vsel %vm877_vm2, %v3282_v20, -inf }
0x10a7   : > { %2325 = vmax.xlane.f32.xlu0 %v2324_v21  ;;  %v2312_v22 = vpop.f32.mrf.mxu1 }
0x10a8   : > { %v2321_v23 = vsel %vm877_vm2, %v2312_v22, -inf }
0x10a9   : > { %2322 = vmax.xlane.f32.xlu1 %v2321_v23 }
0x10ba   : > { %2347 = vrot.lane.b32.xlu1 %v4213_v5, %s3856_s16 }
0x10be   : > { %2343 = vrot.lane.b32.xlu1 %v4209_v1, %s3856_s16 }
0x10c2   : > { %3459 = vrot.lane.b32.xlu1 %v3458_v8, %s3856_s16 }
0x10c6   : > { %3464 = vrot.lane.b32.xlu1 %v3463_v41, %s3855_s19 }
0x10ca   : > { %3474 = vrot.lane.b32.xlu1 %v3473_v55, %s3853_s1 }
0x10ce   : > { %3484 = vrot.lane.b32.xlu1 %v3483_v24, %s3851_s13 }
0x1130   : > { %v2326_v5 = vpop.xlane.xlu0 %2325 }
0x1131   : > { %v2328_v1 = vsub.f32 %v3282_v20, %v2326_v5 }
0x1132   : > { %v2323_v25 = vpop.xlane.xlu1 %2322 }
0x1133   : > { %v2331_v26 = vmul.f32 1.442695, %v2328_v1  ;;  %v2327_v27 = vsub.f32 %v2312_v22, %v2323_v25 }
0x1135   : > { %3549 = vpow2.f32 %v2331_v26  ;;  %v2329_v6 = vmul.f32 1.442695, %v2327_v27 }
0x1136   : > { %v2348_v7 = vpop.permute.xlu1 %2347 }
0x1137   : > { %3551 = vpow2.f32 %v2329_v6  ;;  %3283 = vmatprep.subr.mxu0 %v2348_v7 }
0x1138   : > { %3284 = vmatpush3.msra.mxu0 %v2348_v7 }
0x113a   : > { %v2344_v28 = vpop.permute.xlu1 %2343 }
0x113e   : > { %v3460_v56 = vpop.permute.xlu1 %3459 }
0x113f   : > { %v3462_v59 = vunpack.i.h.bf16 %v3460_v56  ;;  %v3461_v0 = vunpack.i.l.bf16 %v3460_v56 }
0x1141   : > { %v2490_v11 = vsel %vm786_vm1, %v4243_v32, %v3462_v59  ;;  %v2489_v57 = vsel %vm786_vm1, %v4245_v33, %v3461_v0 }
0x1142   : > { %v3550_v8 = vpop.eup %3549  ;;  %v3465_v61 = vpop.permute.xlu1 %3464 }
0x1143   : > { %v2336_v39 = vsel %vm877_vm2, %v3550_v8, 0.0  ;;  %v3467_v60 = vunpack.i.h.bf16 %v3465_v61  ;;  %v3466_v62 = vunpack.i.l.bf16 %v3465_v61 }
0x1144   : > { %v3552_v40 = vpop.eup %3551  ;;  %2337 = vadd.xlane.f32.xlu0 %v2336_v39 }
0x1145   : > { %v2333_v41 = vsel %vm877_vm2, %v3552_v40, 0.0  ;;  %v2492_v12 = vsel %vm2491_vm3, %v2489_v57, %v3466_v62  ;;  %v2493_v63 = vsel %vm2491_vm3, %v2490_v11, %v3467_v60 }
0x1146   : > { %v3475_v2 = vpop.permute.xlu1 %3474 }
0x1147   : > { %v3477_v20 = vunpack.i.h.bf16 %v3475_v2  ;;  %v3476_v21 = vunpack.i.l.bf16 %v3475_v2 }
0x1148   : > { %2334 = vadd.xlane.f32.xlu0 %v2333_v41 }
0x114a   : > { %v3485_v22 = vpop.permute.xlu1 %3484 }
0x114b   : > { %v3487_v32 = vunpack.i.h.bf16 %v3485_v22  ;;  %v3486_v33 = vunpack.i.l.bf16 %v3485_v22 }
0x115e   : > { %2345 = vrot.lane.b32.xlu0 %v4211_v3, %s3856_s16 }
0x1162   : > { %3469 = vrot.lane.b32.xlu0 %v3468_v19, %s3854_s22  ;;  %v2523_v19 = vld [vmem:[#allocation15 + $0x70] sm:$0xff] }
0x1166   : > { %3479 = vrot.lane.b32.xlu0 %v3478_v38, %s3852_s14  ;;  %v2517_v38 = vld [vmem:[#allocation15 + $0x40] sm:$0xff] }
0x11cd   : > { %v2338_v53 = vpop.xlane.xlu0 %2337 }
0x11ce   : > { %3553 = vrcp.f32 %v2338_v53 }
0x11d1   : > { %v2335_v54 = vpop.xlane.xlu0 %2334 }
0x11d2   : > { %3555 = vrcp.f32 %v2335_v54 }
0x11d5   : > { %v2346_v55 = vpop.permute.xlu0 %2345 }
0x11d6   : > { %3285 = vmatprep.subr.mxu0 %v2346_v55 }
0x11d7   : > { %3286 = vmatpush3.msra.mxu0 %v2346_v55 }
0x11d8   : > { %3287 = vmatprep.subr.mxu0 %v2344_v28 }
0x11d9   : > { %3288 = vmatpush3.msra.mxu0 %v2344_v28  ;;  %v3470_v58 = vpop.permute.xlu0 %3469 }
0x11da   : > { %3292 = vmatprep.subr.mxu0 %v2524_v18  ;;  %v3472_v4 = vunpack.i.h.bf16 %v3470_v58  ;;  %v3471_v9 = vunpack.i.l.bf16 %v3470_v58 }
0x11db   : > { %v3554_v3 = vpop.eup %3553 }
0x11dc   : > { %v2342_v17 = vmul.f32 %v3554_v3, %v3550_v8  ;;  %v2495_v13 = vsel %vm2494_vm4, %v2492_v12, %v3471_v9  ;;  %v2496_v14 = vsel %vm2494_vm4, %v2493_v63, %v3472_v4 }
0x11dd   : > { %v3480_v10 = vpop.permute.xlu0 %3479  ;;  %v2499_v23 = vsel %vm2497_vm5, %v2496_v14, %v3477_v20  ;;  %v2498_v24 = vsel %vm2497_vm5, %v2495_v13, %v3476_v21 }
0x11de   : > { %v3482_v15 = vunpack.i.h.bf16 %v3480_v10  ;;  %v3481_v16 = vunpack.i.l.bf16 %v3480_v10 }
0x11df   : > { %v3556_v29 = vpop.eup %3555 }
0x11e0   : > { %v2341_v30 = vmul.f32 %v3556_v29, %v3552_v40  ;;  %v2502_v5 = vsel %vm2500_vm6, %v2499_v23, %v3482_v15  ;;  %v2501_v1 = vsel %vm2500_vm6, %v2498_v24, %v3481_v16  ;;  %v2869_v40 = vld [vmem:[%s4561_s7] ss:$0 sm:$0xff] }
0x11e1   : > { %v2504_v6 = vsel %vm2503_vm7, %v2501_v1, %v3486_v33  ;;  %v2505_v7 = vsel %vm2503_vm7, %v2502_v5, %v3487_v32 }
0x11e2   : > { %3289 = vmatprep.mubr.msk.f32.mxu0 %vm877_vm2, %v2341_v30 }
0x11e3   : > { %3290 = vmatmul.mubr.msk.f32.vlgmr.msra.gmra.mxu0 %vm877_vm2, %v2342_v17 }
0x11e4   : > { %3293 = vmatpush3.msra.mxu0 %v2524_v18 }
0x11e5   : > { %3294 = vmatprep.subr.mxu0 %v2523_v19 }
0x11e6   : > { %3295 = vmatpush3.msra.mxu0 %v2523_v19 }
0x11e7   : > { %3296 = vmatprep.subr.mxu0 %v2522_v31 }
0x11e8   : > { %3297 = vmatpush3.msra.mxu0 %v2522_v31 }
0x11e9   : > { %3298 = vmatprep.subr.mxu0 %v2521_v34 }
0x11ea   : > { %3299 = vmatpush3.msra.mxu0 %v2521_v34 }
0x11eb   : > { %3300 = vmatprep.subr.mxu0 %v2520_v35 }
0x11ec   : > { %3301 = vmatpush3.msra.mxu0 %v2520_v35 }
0x11ed   : > { %3302 = vmatprep.subr.mxu0 %v2519_v36 }
0x11ee   : > { %3303 = vmatpush3.msra.mxu0 %v2519_v36 }
0x11ef   : > { %3304 = vmatprep.subr.mxu0 %v2518_v37 }
0x11f0   : > { %3305 = vmatpush3.msra.mxu0 %v2518_v37 }
0x11f1   : > { %3306 = vmatprep.subr.mxu0 %v2517_v38 }
0x11f2   : > { %3307 = vmatpush3.msra.mxu0 %v2517_v38 }
0x11f3   : > { %3308 = vmatprep.subr.mxu0 %v2516_v42 }
0x11f4   : > { %3309 = vmatpush3.msra.mxu0 %v2516_v42 }
0x11f5   : > { %3310 = vmatprep.subr.mxu0 %v2515_v43 }
0x11f6   : > { %3311 = vmatpush3.msra.mxu0 %v2515_v43 }
0x11f7   : > { %3312 = vmatprep.subr.mxu0 %v2514_v44 }
0x11f8   : > { %3313 = vmatpush3.msra.mxu0 %v2514_v44 }
0x11f9   : > { %3314 = vmatprep.subr.mxu0 %v2513_v45 }
0x11fa   : > { %3315 = vmatpush3.msra.mxu0 %v2513_v45 }
0x11fb   : > { %3316 = vmatprep.subr.mxu0 %v2512_v46 }
0x11fc   : > { %3317 = vmatpush3.msra.mxu0 %v2512_v46 }
0x11fd   : > { %3318 = vmatprep.subr.mxu0 %v2511_v47 }
0x11fe   : > { %3319 = vmatpush3.msra.mxu0 %v2511_v47 }
0x11ff   : > { %3320 = vmatprep.subr.mxu0 %v2510_v48 }
0x1200   : > { %3321 = vmatpush3.msra.mxu0 %v2510_v48 }
0x1201   : > { %3322 = vmatprep.subr.mxu0 %v2509_v49 }
0x1202   : > { %3323 = vmatpush3.msra.mxu0 %v2509_v49 }
0x12a3   : > { %v3291_v50 = vpop.f32.mrf.mxu0 }
0x12a5   : > { %v2424_v51 = vpop.f32.mrf.mxu0 }
0x12a6   : > { %v3488_v52 = vpack.i.bf16 %v3291_v50, %v2424_v51 }
0x12a8   : > { %3489 = vrot.lane.b32.xlu0 %v3488_v52, %s3850_s11 }
0x131a   : > { %v3490_v25 = vpop.permute.xlu0 %3489 }
0x131b   : > { %v3492_v26 = vunpack.i.h.bf16 %v3490_v25  ;;  %v3491_v27 = vunpack.i.l.bf16 %v3490_v25 }
0x131d   : > { %v2507_v8 = vsel %vm2506_vm8, %v2504_v6, %v3491_v27  ;;  %v2508_v39 = vsel %vm2506_vm8, %v2505_v7, %v3492_v26 }
0x131e   : > { %3324 = vmatprep.mubr.f32.mxu0 %v2507_v8 }
0x131f   : > { %3325 = vmatmul.mubr.f32.vlgmr.msra.gmra.mxu0 %v2508_v39 }
0x13df   : > { %v3326_v41 = vpop.f32.mrf.mxu0 }
0x13e0   : > { %v2604_v53 = vadd.f32 %v3326_v41, %v2869_v40 }
0x13e1   : > { %v2598_v54 = vpop.f32.mrf.mxu0 }
0x13e2   : > { %2608 = vst [vmem:[%s476_s12 + $0x8] sm:$0xff] %v2604_v53  ;;  %v2599_v55 = vadd.f32 %v2869_v40, %v2598_v54 }
0x13e4   : > { %2607 = vst [vmem:[%s476_s12] sm:$0xff] %v2599_v55 }
0x13e5   : > { %3758 = shalt.err (!%p3755_p13)
}
0x13e6   : > { %s3759_s5 = scalar_lea.hbm %s4506_s27, 256  ;;  %s3763_s11 = scalar_lea.hbm %s4562_s8, 512 }
0x13e7   : > { %p3760_p0 = scmp.ne.s32.totalorder %s4506_s27, %s3759_s5  ;;  %p3764_p8 = scmp.lt.s32.totalorder %s4506_s27, %s4562_s8 }
0x13e8   : > { %p3765_p12 = scmp.lt.s32.totalorder %s3763_s11, %s3759_s5 }
0x13e9   : > { %p3761_p10 = pnand %p3760_p0, %p4002_p7 }
0x13ea   : > { %p3766_p5 = por %p3765_p12, %p3764_p8 }
0x13eb   : > { %p3762_p1 = pneg %p3761_p10 }
0x13ed   : > { %p3767_p4 = pnand %p3766_p5, %p3762_p1 }
0x13ef   : > { %3770 = shalt.err (!%p3767_p4)
}
0x13f0   : > { %s3858_s1 = smov 128   ;;  %s3859_s22 = smov 8  }
0x13f1   : > { %3354 = dma.vmem_to_hbm [thread:$0]  (%p4002_p7), %s4501_s23, 256, %s4506_s27, %s2610_s25, %s3858_s1, %s3858_s1, %s3859_s22  }
0x13f2 PF: > { %s4612_s19 = sld [smem:[#allocation22_spill]] }
0x13f3   : > { %s4613_s16 = sld [smem:[#allocation25_spill]] }
0x13f4   : > { %s4614_s4 = sld [smem:[#allocation24_spill]] }
0x13f8   : > { %s2640_s29 = sand.u32 1, %s4612_s19  }
0x13f9   : > { %p4615_p2 = scmp.ne.s32.totalorder %s4613_s16, 0  ;;  %s2641_s12 = scalar_lea.sflag [#allocation6], %s2640_s29 }
0x13fa   : > { %p4616_p3 = scmp.ge.s32.totalorder %s4614_s4, 2 }
0x13fc   : > { %p3380_p6 = pnand %p4616_p3, %p4615_p2 }
0x13fe   : > { %p3381_p11 = pneg %p3380_p6 }
0x1400   : > { %3812 = dma.done.wait (%p3381_p11), %s2641_s12, 256  }
0x1401   : > { %3814 = vsyncadd (%p3381_p11), %s2641_s12, 4294967040  ;;  %s29_s10 = sadd.s32 1, %s4614_s4   ;;  %s4617_s6 = sld [smem:[#allocation23_spill]] }
0x1402   : > { %p26_p9 = scmp.ge.s32.totalorder %s29_s10, 4   ;;  %s4618_s29 = sld [smem:[#allocation27_spill]] }
0x1403   : > { %s4619_s21 = sld [smem:[#allocation26_spill]]  ;;  %s4620_s27 = smov %s3821_s28 }
0x1404   : > { %s4622_s30 = smov %s3833_s9 }
0x1405   :  { %28 = sbr.rel (!%p26_p9) target bundleno = 16 (0x10), region = 141 }
0x1407   : > { %s4621_s28 = smov %s4617_s6 }
0x1409   : > { %s4623_s9 = smov %s4619_s21 }
0x140a   :  { %2646 = vsyncpa [#allocation5], 1 }
0x140b   :  { %2648 = vsyncpa [#allocation5 + $0x1], 1 }
0x140c   :  { %2649 = vsyncpa [#allocation8], 1 }
0x140d   :  { %2651 = vsyncpa [#allocation8 + $0x1], 1 }
0x140e   :  { %2652 = vsyncpa [#allocation11], 1 }
0x140f   :  { %2653 = vsyncpa [#allocation14], 1 }
0x1410   :  { %2654 = vsyncpa [#allocation6], 1 }
0x1411   :  { %2656 = vsyncpa [#allocation6 + $0x1], 1 }

</bundles_post_ra>
